<compile_context>
chip_gen: v5e
topology: v5e:2x2
jax: 0.10.0
libtpu: 0.0.40
codegen_flags: <defaults>
</compile_context>

<pallas_src>
import functools

import jax
import jax.numpy as jnp
from jax import lax
from jax.experimental import pallas as pl
from jax.experimental.pallas import tpu as pltpu


def _round_up(x, m):
    return (x + m - 1) // m * m


def _fused_encoder_kernel(p2_ref, w1_ref, w2_ref, b2_ref, o_ref, *, n_tap, c2p, blk):
    """One block of `blk` layer-2 output pixels; both conv+tanh layers fused.

    p2_ref: (K1P, n_tap*blk) bf16  layer-1 patch columns grouped per layer-2 tap
            (tap-major inside the block; blocks are pixel-block-major globally).
            Row 25 is the layer-1 bias/valid row; rows 26..31 are zero padding.
    w1_ref: (C1P, K1P)       bf16  layer-1 weights, bias folded into column 25.
    w2_ref: (n_tap*C2P, C1P) bf16  layer-2 weights, rows grouped by layer-2 tap.
    b2_ref: (C2P, 1)         f32   layer-2 bias (VPU add, lane-broadcast).
    o_ref : (C2P, blk)       f32   final tanh activations (unmasked 128*k-lane store).
    """
    w1 = w1_ref[...]
    acc = jnp.zeros(o_ref.shape, jnp.float32)
    for t in range(n_tap):
        # Layer 1 for the columns this layer-2 tap needs: bf16 MXU GEMM, f32 acc,
        # bias rides the valid row (so out-of-bounds columns give tanh(0)=0).
        z = jnp.dot(w1, p2_ref[:, t * blk:(t + 1) * blk],
                    preferred_element_type=jnp.float32)
        h = jnp.tanh(z).astype(jnp.bfloat16)                      # f32 tanh on EUP
        # Layer 2: accumulate this tap's (C2P, C1P) weight block against h.
        acc += jnp.dot(w2_ref[t * c2p:(t + 1) * c2p, :], h,
                       preferred_element_type=jnp.float32)
    o_ref[...] = jnp.tanh(acc + b2_ref[...])                      # b2 via VPU add


def encoder_forward(x, params, *, block_cols=512, vmem_limit_bytes=48 * 1024 * 1024):
    (w1, b1), (w2, b2) = params
    N, c_in, H, W = x.shape
    assert c_in == 1, "Encoder expects a single input channel"
    C1, _, KH, KW = w1.shape          # (3, 1, 5, 5)
    C2 = w2.shape[0]                  # 6
    S, P = 3, 2

    Ho1 = (H + 2 * P - KH) // S + 1
    Wo1 = (W + 2 * P - KW) // S + 1
    Ho2 = (Ho1 + 2 * P - KH) // S + 1
    Wo2 = (Wo1 + 2 * P - KW) // S + 1
    n_tap = KH * KW                   # 25
    M2 = N * Ho2 * Wo2                # layer-2 output pixels

    C1P = C2P = 8                     # channel dims padded to a sublane group
    K1P = _round_up(n_tap + 1, 8)     # 32 = 25 taps + bias/valid row, padded
    L = max(128, min(_round_up(block_cols, 128), _round_up(M2, 128)))
    M2pad = _round_up(M2, L)
    n_blk = M2pad // L

    dt = jnp.bfloat16
    xb = x[:, 0].astype(dt)           # bf16 operands: halves all downstream bytes

    # ---- layer-1 im2col: 25 static strided slices of the padded input ----------
    xp = jnp.pad(xb, ((0, 0), (P, P), (P, P)))
    p1 = jnp.stack([xp[:, ky:ky + S * Ho1:S, kx:kx + S * Wo1:S]
                    for ky in range(KH) for kx in range(KW)], axis=0)  # (25,N,Ho1,Wo1)

    # ---- layer-2 tap expansion: 25 static strided slices + valid plane ---------
    # Spatial zero-padding of the layer-1 patch grid makes out-of-bounds layer-1
    # pixels contribute patch=0 AND valid=0, so tanh(W1.patch + b1*valid) == 0
    # there, exactly matching Conv2d's zero padding of the layer-1 output.
    p1p = jnp.pad(p1, ((0, 0), (0, 0), (P, P), (P, P)))
    vp = jnp.pad(jnp.ones((N, Ho1, Wo1), dt), ((0, 0), (P, P), (P, P)))
    taps, vals = [], []
    for ky in range(KH):
        for kx in range(KW):
            taps.append(p1p[:, :, ky:ky + S * Ho2:S, kx:kx + S * Wo2:S])
            vals.append(vp[:, ky:ky + S * Ho2:S, kx:kx + S * Wo2:S])
    pt = jnp.stack(taps, axis=1).reshape(n_tap, n_tap, M2)   # (k1, t2, M2)
    vt = jnp.stack(vals, axis=0).reshape(n_tap, M2)          # (t2, M2)

    rows = jnp.concatenate([pt, vt[None]], axis=0)           # (26, t2, M2)
    rows = jnp.pad(rows, ((0, K1P - (n_tap + 1)), (0, 0), (0, M2pad - M2)))
    # Pixel-block-major column order: (k, blk, t2, j) so each grid step's input is
    # ONE contiguous (K1P, n_tap*L) tile -> automatic double-buffered DMA.
    p2 = rows.reshape(K1P, n_tap, n_blk, L).transpose(0, 2, 1, 3)
    p2 = p2.reshape(K1P, n_blk * n_tap * L)

    # ---- weights: bias folded into W1; W2 tap-major along sublanes -------------
    w1m = jnp.zeros((C1P, K1P), jnp.float32)
    w1m = w1m.at[:C1, :n_tap].set(w1.reshape(C1, n_tap)).at[:C1, n_tap].set(b1)
    w1m = w1m.astype(dt)

    w2t = jnp.transpose(w2, (2, 3, 0, 1)).reshape(n_tap, C2, C1)     # (t2, c2, c1)
    w2s = jnp.zeros((n_tap, C2P, C1P), jnp.float32).at[:, :C2, :C1].set(w2t)
    w2s = w2s.reshape(n_tap * C2P, C1P).astype(dt)

    b2p = jnp.zeros((C2P, 1), jnp.float32).at[:C2, 0].set(b2)

    kern = functools.partial(_fused_encoder_kernel, n_tap=n_tap, c2p=C2P, blk=L)
    out = pl.pallas_call(
        kern,
        out_shape=jax.ShapeDtypeStruct((C2P, M2pad), jnp.float32),
        grid_spec=pltpu.PrefetchScalarGridSpec(
            num_scalar_prefetch=0,
            grid=(n_blk,),
            in_specs=[
                pl.BlockSpec((K1P, n_tap * L), lambda i: (0, i)),     # pipelined
                pl.BlockSpec((C1P, K1P), lambda i: (0, 0)),           # resident
                pl.BlockSpec((n_tap * C2P, C1P), lambda i: (0, 0)),   # resident
                pl.BlockSpec((C2P, 1), lambda i: (0, 0)),             # resident
            ],
            out_specs=pl.BlockSpec((C2P, L), lambda i: (0, i)),
        ),
        compiler_params=pltpu.CompilerParams(
            dimension_semantics=("parallel",),      # 2-TC sharding on v7x
            vmem_limit_bytes=vmem_limit_bytes,
        ),
    )(p2, w1m, w2s, b2p)

    # (C2P, M2pad) -> (N, C2, Ho2, Wo2)
    return out[:C2, :M2].reshape(C2, N, Ho2, Wo2).transpose(1, 0, 2, 3)


def _ref_forward(x, params, operand_dtype=jnp.float32):
    """Pure-JAX reference (PyTorch Conv2d semantics). operand_dtype=bf16 mirrors the
    kernel's bf16-operand / f32-accumulate numerics for a tight comparison."""
    def conv_tanh(inp, w, b):
        y = lax.conv_general_dilated(
            inp.astype(operand_dtype), w.astype(operand_dtype),
            window_strides=(3, 3), padding=((2, 2), (2, 2)),
            dimension_numbers=("NCHW", "OIHW", "NCHW"),
            preferred_element_type=jnp.float32)
        b_eff = b.astype(operand_dtype).astype(jnp.float32)
        return jnp.tanh(y + b_eff.reshape(1, -1, 1, 1))
    (w1, b1), (w2, b2) = params
    return conv_tanh(conv_tanh(x, w1, b1), w2, b2)


if __name__ == "__main__":
    key = jax.random.PRNGKey(0)
    kx_, k1, k2, k3, k4 = jax.random.split(key, 5)

    # Deterministic synthetic parameters (shapes from the nn.Conv2d definitions).
    w1 = jax.random.normal(k1, (3, 1, 5, 5), jnp.float32) * 0.2
    b1 = jax.random.normal(k2, (3,), jnp.float32) * 0.1
    w2 = jax.random.normal(k3, (6, 3, 5, 5), jnp.float32) * 0.2
    b2 = jax.random.normal(k4, (6,), jnp.float32) * 0.1
    params = ((w1, b1), (w2, b2))

    fwd = jax.jit(functools.partial(encoder_forward, block_cols=128))

    # Config A: small spec-consistent case (batch=2, 1 channel, 36x36 -> 1 block).
    xA = jax.random.normal(kx_, (2, 1, 36, 36), jnp.float32)
    outA = jax.block_until_ready(fwd(xA, params))
    assert outA.shape == (2, 6, 4, 4), outA.shape

    # Config B: larger batch so the pixel-block grid has >1 step (exercises the
    # pipelined "parallel" lane axis and the padded last block).
    xB = jax.random.normal(kx_, (13, 1, 36, 36), jnp.float32)
    outB = jax.block_until_ready(fwd(xB, params))
    assert outB.shape == (13, 6, 4, 4), outB.shape

    for x_, out_ in ((xA, outA), (xB, outB)):
        ref_bf16 = _ref_forward(x_, params, operand_dtype=jnp.bfloat16)
        ref_f32 = _ref_forward(x_, params)
        # Tight check vs. the precision-matched (bf16-operand) reference.
        assert jnp.allclose(out_, ref_bf16, atol=2e-3, rtol=2e-3), \
            float(jnp.max(jnp.abs(out_ - ref_bf16)))
        # Sanity check vs. the pure-f32 reference (bf16 operands => looser tol).
        assert jnp.allclose(out_, ref_f32, atol=1e-1), \
            float(jnp.max(jnp.abs(out_ - ref_f32)))

    print("KERNEL_OK")
</pallas_src>

<mosaic_0001>
module attributes {stable_mosaic.version = 11 : i64} {
  func.func @_fused_encoder_kernel(%arg0: i32, %arg1: memref<32x3200xbf16, #tpu.memory_space<vmem>>, %arg2: memref<8x32xbf16, #tpu.memory_space<vmem>>, %arg3: memref<200x8xbf16, #tpu.memory_space<vmem>>, %arg4: memref<8x1xf32, #tpu.memory_space<vmem>>, %arg5: memref<8x128xf32, #tpu.memory_space<vmem>>) attributes {dimension_semantics = [#tpu.dimension_semantics<parallel>], iteration_bounds = array<i64: 1>, scalar_prefetch = 0 : i64, scratch_operands = 0 : i64, tpu.core_type = #tpu.core_type<tc>, window_params = [{transform_indices = @transform_0, window_bounds = array<i64: 32, 3200>}, {pipeline_mode = #tpu.pipeline_mode<synchronous>, transform_indices = @transform_1, window_bounds = array<i64: 8, 32>}, {pipeline_mode = #tpu.pipeline_mode<synchronous>, transform_indices = @transform_2, window_bounds = array<i64: 200, 8>}, {pipeline_mode = #tpu.pipeline_mode<synchronous>, transform_indices = @transform_3, window_bounds = array<i64: 8, 1>}, {transform_indices = @transform_4, window_bounds = array<i64: 8, 128>}]} {
    %c0 = arith.constant 0 : index
    %c0_0 = arith.constant 0 : index
    %0 = vector.load %arg2[%c0, %c0_0] : memref<8x32xbf16, #tpu.memory_space<vmem>>, vector<8x32xbf16>
    %cst = arith.constant 0.000000e+00 : f32
    %1 = vector.broadcast %cst : f32 to vector<8x128xf32>
    %c0_1 = arith.constant 0 : index
    %c0_2 = arith.constant 0 : index
    %2 = vector.load %arg1[%c0_1, %c0_2] : memref<32x3200xbf16, #tpu.memory_space<vmem>>, vector<32x128xbf16>
    %cst_3 = arith.constant dense<0.000000e+00> : vector<8x128xf32>
    %3 = tpu.matmul %0, %2, %cst_3 {dimension_numbers = #tpu.dot_dimension_numbers<[1], [0], [0], [1], [0, 0, 1, 1], [], []>} : vector<8x32xbf16>, vector<32x128xbf16>, vector<8x128xf32> -> vector<8x128xf32>
    %4 = math.tanh %3 : vector<8x128xf32>
    %5 = arith.truncf %4 : vector<8x128xf32> to vector<8x128xbf16>
    %c0_4 = arith.constant 0 : index
    %c0_5 = arith.constant 0 : index
    %6 = vector.load %arg3[%c0_4, %c0_5] : memref<200x8xbf16, #tpu.memory_space<vmem>>, vector<8x8xbf16>
    %cst_6 = arith.constant dense<0.000000e+00> : vector<8x128xf32>
    %7 = tpu.matmul %6, %5, %cst_6 {dimension_numbers = #tpu.dot_dimension_numbers<[1], [0], [0], [1], [0, 0, 1, 1], [], []>} : vector<8x8xbf16>, vector<8x128xbf16>, vector<8x128xf32> -> vector<8x128xf32>
    %8 = arith.addf %1, %7 : vector<8x128xf32>
    %c0_7 = arith.constant 0 : index
    %c128 = arith.constant 128 : index
    %9 = vector.load %arg1[%c0_7, %c128] : memref<32x3200xbf16, #tpu.memory_space<vmem>>, vector<32x128xbf16>
    %cst_8 = arith.constant dense<0.000000e+00> : vector<8x128xf32>
    %10 = tpu.matmul %0, %9, %cst_8 {dimension_numbers = #tpu.dot_dimension_numbers<[1], [0], [0], [1], [0, 0, 1, 1], [], []>} : vector<8x32xbf16>, vector<32x128xbf16>, vector<8x128xf32> -> vector<8x128xf32>
    %11 = math.tanh %10 : vector<8x128xf32>
    %12 = arith.truncf %11 : vector<8x128xf32> to vector<8x128xbf16>
    %c8 = arith.constant 8 : index
    %c0_9 = arith.constant 0 : index
    %13 = vector.load %arg3[%c8, %c0_9] : memref<200x8xbf16, #tpu.memory_space<vmem>>, vector<8x8xbf16>
    %cst_10 = arith.constant dense<0.000000e+00> : vector<8x128xf32>
    %14 = tpu.matmul %13, %12, %cst_10 {dimension_numbers = #tpu.dot_dimension_numbers<[1], [0], [0], [1], [0, 0, 1, 1], [], []>} : vector<8x8xbf16>, vector<8x128xbf16>, vector<8x128xf32> -> vector<8x128xf32>
    %15 = arith.addf %8, %14 : vector<8x128xf32>
    %c0_11 = arith.constant 0 : index
    %c256 = arith.constant 256 : index
    %16 = vector.load %arg1[%c0_11, %c256] : memref<32x3200xbf16, #tpu.memory_space<vmem>>, vector<32x128xbf16>
    %cst_12 = arith.constant dense<0.000000e+00> : vector<8x128xf32>
    %17 = tpu.matmul %0, %16, %cst_12 {dimension_numbers = #tpu.dot_dimension_numbers<[1], [0], [0], [1], [0, 0, 1, 1], [], []>} : vector<8x32xbf16>, vector<32x128xbf16>, vector<8x128xf32> -> vector<8x128xf32>
    %18 = math.tanh %17 : vector<8x128xf32>
    %19 = arith.truncf %18 : vector<8x128xf32> to vector<8x128xbf16>
    %c16 = arith.constant 16 : index
    %c0_13 = arith.constant 0 : index
    %20 = vector.load %arg3[%c16, %c0_13] : memref<200x8xbf16, #tpu.memory_space<vmem>>, vector<8x8xbf16>
    %cst_14 = arith.constant dense<0.000000e+00> : vector<8x128xf32>
    %21 = tpu.matmul %20, %19, %cst_14 {dimension_numbers = #tpu.dot_dimension_numbers<[1], [0], [0], [1], [0, 0, 1, 1], [], []>} : vector<8x8xbf16>, vector<8x128xbf16>, vector<8x128xf32> -> vector<8x128xf32>
    %22 = arith.addf %15, %21 : vector<8x128xf32>
    %c0_15 = arith.constant 0 : index
    %c384 = arith.constant 384 : index
    %23 = vector.load %arg1[%c0_15, %c384] : memref<32x3200xbf16, #tpu.memory_space<vmem>>, vector<32x128xbf16>
    %cst_16 = arith.constant dense<0.000000e+00> : vector<8x128xf32>
    %24 = tpu.matmul %0, %23, %cst_16 {dimension_numbers = #tpu.dot_dimension_numbers<[1], [0], [0], [1], [0, 0, 1, 1], [], []>} : vector<8x32xbf16>, vector<32x128xbf16>, vector<8x128xf32> -> vector<8x128xf32>
    %25 = math.tanh %24 : vector<8x128xf32>
    %26 = arith.truncf %25 : vector<8x128xf32> to vector<8x128xbf16>
    %c24 = arith.constant 24 : index
    %c0_17 = arith.constant 0 : index
    %27 = vector.load %arg3[%c24, %c0_17] : memref<200x8xbf16, #tpu.memory_space<vmem>>, vector<8x8xbf16>
    %cst_18 = arith.constant dense<0.000000e+00> : vector<8x128xf32>
    %28 = tpu.matmul %27, %26, %cst_18 {dimension_numbers = #tpu.dot_dimension_numbers<[1], [0], [0], [1], [0, 0, 1, 1], [], []>} : vector<8x8xbf16>, vector<8x128xbf16>, vector<8x128xf32> -> vector<8x128xf32>
    %29 = arith.addf %22, %28 : vector<8x128xf32>
    %c0_19 = arith.constant 0 : index
    %c512 = arith.constant 512 : index
    %30 = vector.load %arg1[%c0_19, %c512] : memref<32x3200xbf16, #tpu.memory_space<vmem>>, vector<32x128xbf16>
    %cst_20 = arith.constant dense<0.000000e+00> : vector<8x128xf32>
    %31 = tpu.matmul %0, %30, %cst_20 {dimension_numbers = #tpu.dot_dimension_numbers<[1], [0], [0], [1], [0, 0, 1, 1], [], []>} : vector<8x32xbf16>, vector<32x128xbf16>, vector<8x128xf32> -> vector<8x128xf32>
    %32 = math.tanh %31 : vector<8x128xf32>
    %33 = arith.truncf %32 : vector<8x128xf32> to vector<8x128xbf16>
    %c32 = arith.constant 32 : index
    %c0_21 = arith.constant 0 : index
    %34 = vector.load %arg3[%c32, %c0_21] : memref<200x8xbf16, #tpu.memory_space<vmem>>, vector<8x8xbf16>
    %cst_22 = arith.constant dense<0.000000e+00> : vector<8x128xf32>
    %35 = tpu.matmul %34, %33, %cst_22 {dimension_numbers = #tpu.dot_dimension_numbers<[1], [0], [0], [1], [0, 0, 1, 1], [], []>} : vector<8x8xbf16>, vector<8x128xbf16>, vector<8x128xf32> -> vector<8x128xf32>
    %36 = arith.addf %29, %35 : vector<8x128xf32>
    %c0_23 = arith.constant 0 : index
    %c640 = arith.constant 640 : index
    %37 = vector.load %arg1[%c0_23, %c640] : memref<32x3200xbf16, #tpu.memory_space<vmem>>, vector<32x128xbf16>
    %cst_24 = arith.constant dense<0.000000e+00> : vector<8x128xf32>
    %38 = tpu.matmul %0, %37, %cst_24 {dimension_numbers = #tpu.dot_dimension_numbers<[1], [0], [0], [1], [0, 0, 1, 1], [], []>} : vector<8x32xbf16>, vector<32x128xbf16>, vector<8x128xf32> -> vector<8x128xf32>
    %39 = math.tanh %38 : vector<8x128xf32>
    %40 = arith.truncf %39 : vector<8x128xf32> to vector<8x128xbf16>
    %c40 = arith.constant 40 : index
    %c0_25 = arith.constant 0 : index
    %41 = vector.load %arg3[%c40, %c0_25] : memref<200x8xbf16, #tpu.memory_space<vmem>>, vector<8x8xbf16>
    %cst_26 = arith.constant dense<0.000000e+00> : vector<8x128xf32>
    %42 = tpu.matmul %41, %40, %cst_26 {dimension_numbers = #tpu.dot_dimension_numbers<[1], [0], [0], [1], [0, 0, 1, 1], [], []>} : vector<8x8xbf16>, vector<8x128xbf16>, vector<8x128xf32> -> vector<8x128xf32>
    %43 = arith.addf %36, %42 : vector<8x128xf32>
    %c0_27 = arith.constant 0 : index
    %c768 = arith.constant 768 : index
    %44 = vector.load %arg1[%c0_27, %c768] : memref<32x3200xbf16, #tpu.memory_space<vmem>>, vector<32x128xbf16>
    %cst_28 = arith.constant dense<0.000000e+00> : vector<8x128xf32>
    %45 = tpu.matmul %0, %44, %cst_28 {dimension_numbers = #tpu.dot_dimension_numbers<[1], [0], [0], [1], [0, 0, 1, 1], [], []>} : vector<8x32xbf16>, vector<32x128xbf16>, vector<8x128xf32> -> vector<8x128xf32>
    %46 = math.tanh %45 : vector<8x128xf32>
    %47 = arith.truncf %46 : vector<8x128xf32> to vector<8x128xbf16>
    %c48 = arith.constant 48 : index
    %c0_29 = arith.constant 0 : index
    %48 = vector.load %arg3[%c48, %c0_29] : memref<200x8xbf16, #tpu.memory_space<vmem>>, vector<8x8xbf16>
    %cst_30 = arith.constant dense<0.000000e+00> : vector<8x128xf32>
    %49 = tpu.matmul %48, %47, %cst_30 {dimension_numbers = #tpu.dot_dimension_numbers<[1], [0], [0], [1], [0, 0, 1, 1], [], []>} : vector<8x8xbf16>, vector<8x128xbf16>, vector<8x128xf32> -> vector<8x128xf32>
    %50 = arith.addf %43, %49 : vector<8x128xf32>
    %c0_31 = arith.constant 0 : index
    %c896 = arith.constant 896 : index
    %51 = vector.load %arg1[%c0_31, %c896] : memref<32x3200xbf16, #tpu.memory_space<vmem>>, vector<32x128xbf16>
    %cst_32 = arith.constant dense<0.000000e+00> : vector<8x128xf32>
    %52 = tpu.matmul %0, %51, %cst_32 {dimension_numbers = #tpu.dot_dimension_numbers<[1], [0], [0], [1], [0, 0, 1, 1], [], []>} : vector<8x32xbf16>, vector<32x128xbf16>, vector<8x128xf32> -> vector<8x128xf32>
    %53 = math.tanh %52 : vector<8x128xf32>
    %54 = arith.truncf %53 : vector<8x128xf32> to vector<8x128xbf16>
    %c56 = arith.constant 56 : index
    %c0_33 = arith.constant 0 : index
    %55 = vector.load %arg3[%c56, %c0_33] : memref<200x8xbf16, #tpu.memory_space<vmem>>, vector<8x8xbf16>
    %cst_34 = arith.constant dense<0.000000e+00> : vector<8x128xf32>
    %56 = tpu.matmul %55, %54, %cst_34 {dimension_numbers = #tpu.dot_dimension_numbers<[1], [0], [0], [1], [0, 0, 1, 1], [], []>} : vector<8x8xbf16>, vector<8x128xbf16>, vector<8x128xf32> -> vector<8x128xf32>
    %57 = arith.addf %50, %56 : vector<8x128xf32>
    %c0_35 = arith.constant 0 : index
    %c1024 = arith.constant 1024 : index
    %58 = vector.load %arg1[%c0_35, %c1024] : memref<32x3200xbf16, #tpu.memory_space<vmem>>, vector<32x128xbf16>
    %cst_36 = arith.constant dense<0.000000e+00> : vector<8x128xf32>
    %59 = tpu.matmul %0, %58, %cst_36 {dimension_numbers = #tpu.dot_dimension_numbers<[1], [0], [0], [1], [0, 0, 1, 1], [], []>} : vector<8x32xbf16>, vector<32x128xbf16>, vector<8x128xf32> -> vector<8x128xf32>
    %60 = math.tanh %59 : vector<8x128xf32>
    %61 = arith.truncf %60 : vector<8x128xf32> to vector<8x128xbf16>
    %c64 = arith.constant 64 : index
    %c0_37 = arith.constant 0 : index
    %62 = vector.load %arg3[%c64, %c0_37] : memref<200x8xbf16, #tpu.memory_space<vmem>>, vector<8x8xbf16>
    %cst_38 = arith.constant dense<0.000000e+00> : vector<8x128xf32>
    %63 = tpu.matmul %62, %61, %cst_38 {dimension_numbers = #tpu.dot_dimension_numbers<[1], [0], [0], [1], [0, 0, 1, 1], [], []>} : vector<8x8xbf16>, vector<8x128xbf16>, vector<8x128xf32> -> vector<8x128xf32>
    %64 = arith.addf %57, %63 : vector<8x128xf32>
    %c0_39 = arith.constant 0 : index
    %c1152 = arith.constant 1152 : index
    %65 = vector.load %arg1[%c0_39, %c1152] : memref<32x3200xbf16, #tpu.memory_space<vmem>>, vector<32x128xbf16>
    %cst_40 = arith.constant dense<0.000000e+00> : vector<8x128xf32>
    %66 = tpu.matmul %0, %65, %cst_40 {dimension_numbers = #tpu.dot_dimension_numbers<[1], [0], [0], [1], [0, 0, 1, 1], [], []>} : vector<8x32xbf16>, vector<32x128xbf16>, vector<8x128xf32> -> vector<8x128xf32>
    %67 = math.tanh %66 : vector<8x128xf32>
    %68 = arith.truncf %67 : vector<8x128xf32> to vector<8x128xbf16>
    %c72 = arith.constant 72 : index
    %c0_41 = arith.constant 0 : index
    %69 = vector.load %arg3[%c72, %c0_41] : memref<200x8xbf16, #tpu.memory_space<vmem>>, vector<8x8xbf16>
    %cst_42 = arith.constant dense<0.000000e+00> : vector<8x128xf32>
    %70 = tpu.matmul %69, %68, %cst_42 {dimension_numbers = #tpu.dot_dimension_numbers<[1], [0], [0], [1], [0, 0, 1, 1], [], []>} : vector<8x8xbf16>, vector<8x128xbf16>, vector<8x128xf32> -> vector<8x128xf32>
    %71 = arith.addf %64, %70 : vector<8x128xf32>
    %c0_43 = arith.constant 0 : index
    %c1280 = arith.constant 1280 : index
    %72 = vector.load %arg1[%c0_43, %c1280] : memref<32x3200xbf16, #tpu.memory_space<vmem>>, vector<32x128xbf16>
    %cst_44 = arith.constant dense<0.000000e+00> : vector<8x128xf32>
    %73 = tpu.matmul %0, %72, %cst_44 {dimension_numbers = #tpu.dot_dimension_numbers<[1], [0], [0], [1], [0, 0, 1, 1], [], []>} : vector<8x32xbf16>, vector<32x128xbf16>, vector<8x128xf32> -> vector<8x128xf32>
    %74 = math.tanh %73 : vector<8x128xf32>
    %75 = arith.truncf %74 : vector<8x128xf32> to vector<8x128xbf16>
    %c80 = arith.constant 80 : index
    %c0_45 = arith.constant 0 : index
    %76 = vector.load %arg3[%c80, %c0_45] : memref<200x8xbf16, #tpu.memory_space<vmem>>, vector<8x8xbf16>
    %cst_46 = arith.constant dense<0.000000e+00> : vector<8x128xf32>
    %77 = tpu.matmul %76, %75, %cst_46 {dimension_numbers = #tpu.dot_dimension_numbers<[1], [0], [0], [1], [0, 0, 1, 1], [], []>} : vector<8x8xbf16>, vector<8x128xbf16>, vector<8x128xf32> -> vector<8x128xf32>
    %78 = arith.addf %71, %77 : vector<8x128xf32>
    %c0_47 = arith.constant 0 : index
    %c1408 = arith.constant 1408 : index
    %79 = vector.load %arg1[%c0_47, %c1408] : memref<32x3200xbf16, #tpu.memory_space<vmem>>, vector<32x128xbf16>
    %cst_48 = arith.constant dense<0.000000e+00> : vector<8x128xf32>
    %80 = tpu.matmul %0, %79, %cst_48 {dimension_numbers = #tpu.dot_dimension_numbers<[1], [0], [0], [1], [0, 0, 1, 1], [], []>} : vector<8x32xbf16>, vector<32x128xbf16>, vector<8x128xf32> -> vector<8x128xf32>
    %81 = math.tanh %80 : vector<8x128xf32>
    %82 = arith.truncf %81 : vector<8x128xf32> to vector<8x128xbf16>
    %c88 = arith.constant 88 : index
    %c0_49 = arith.constant 0 : index
    %83 = vector.load %arg3[%c88, %c0_49] : memref<200x8xbf16, #tpu.memory_space<vmem>>, vector<8x8xbf16>
    %cst_50 = arith.constant dense<0.000000e+00> : vector<8x128xf32>
    %84 = tpu.matmul %83, %82, %cst_50 {dimension_numbers = #tpu.dot_dimension_numbers<[1], [0], [0], [1], [0, 0, 1, 1], [], []>} : vector<8x8xbf16>, vector<8x128xbf16>, vector<8x128xf32> -> vector<8x128xf32>
    %85 = arith.addf %78, %84 : vector<8x128xf32>
    %c0_51 = arith.constant 0 : index
    %c1536 = arith.constant 1536 : index
    %86 = vector.load %arg1[%c0_51, %c1536] : memref<32x3200xbf16, #tpu.memory_space<vmem>>, vector<32x128xbf16>
    %cst_52 = arith.constant dense<0.000000e+00> : vector<8x128xf32>
    %87 = tpu.matmul %0, %86, %cst_52 {dimension_numbers = #tpu.dot_dimension_numbers<[1], [0], [0], [1], [0, 0, 1, 1], [], []>} : vector<8x32xbf16>, vector<32x128xbf16>, vector<8x128xf32> -> vector<8x128xf32>
    %88 = math.tanh %87 : vector<8x128xf32>
    %89 = arith.truncf %88 : vector<8x128xf32> to vector<8x128xbf16>
    %c96 = arith.constant 96 : index
    %c0_53 = arith.constant 0 : index
    %90 = vector.load %arg3[%c96, %c0_53] : memref<200x8xbf16, #tpu.memory_space<vmem>>, vector<8x8xbf16>
    %cst_54 = arith.constant dense<0.000000e+00> : vector<8x128xf32>
    %91 = tpu.matmul %90, %89, %cst_54 {dimension_numbers = #tpu.dot_dimension_numbers<[1], [0], [0], [1], [0, 0, 1, 1], [], []>} : vector<8x8xbf16>, vector<8x128xbf16>, vector<8x128xf32> -> vector<8x128xf32>
    %92 = arith.addf %85, %91 : vector<8x128xf32>
    %c0_55 = arith.constant 0 : index
    %c1664 = arith.constant 1664 : index
    %93 = vector.load %arg1[%c0_55, %c1664] : memref<32x3200xbf16, #tpu.memory_space<vmem>>, vector<32x128xbf16>
    %cst_56 = arith.constant dense<0.000000e+00> : vector<8x128xf32>
    %94 = tpu.matmul %0, %93, %cst_56 {dimension_numbers = #tpu.dot_dimension_numbers<[1], [0], [0], [1], [0, 0, 1, 1], [], []>} : vector<8x32xbf16>, vector<32x128xbf16>, vector<8x128xf32> -> vector<8x128xf32>
    %95 = math.tanh %94 : vector<8x128xf32>
    %96 = arith.truncf %95 : vector<8x128xf32> to vector<8x128xbf16>
    %c104 = arith.constant 104 : index
    %c0_57 = arith.constant 0 : index
    %97 = vector.load %arg3[%c104, %c0_57] : memref<200x8xbf16, #tpu.memory_space<vmem>>, vector<8x8xbf16>
    %cst_58 = arith.constant dense<0.000000e+00> : vector<8x128xf32>
    %98 = tpu.matmul %97, %96, %cst_58 {dimension_numbers = #tpu.dot_dimension_numbers<[1], [0], [0], [1], [0, 0, 1, 1], [], []>} : vector<8x8xbf16>, vector<8x128xbf16>, vector<8x128xf32> -> vector<8x128xf32>
    %99 = arith.addf %92, %98 : vector<8x128xf32>
    %c0_59 = arith.constant 0 : index
    %c1792 = arith.constant 1792 : index
    %100 = vector.load %arg1[%c0_59, %c1792] : memref<32x3200xbf16, #tpu.memory_space<vmem>>, vector<32x128xbf16>
    %cst_60 = arith.constant dense<0.000000e+00> : vector<8x128xf32>
    %101 = tpu.matmul %0, %100, %cst_60 {dimension_numbers = #tpu.dot_dimension_numbers<[1], [0], [0], [1], [0, 0, 1, 1], [], []>} : vector<8x32xbf16>, vector<32x128xbf16>, vector<8x128xf32> -> vector<8x128xf32>
    %102 = math.tanh %101 : vector<8x128xf32>
    %103 = arith.truncf %102 : vector<8x128xf32> to vector<8x128xbf16>
    %c112 = arith.constant 112 : index
    %c0_61 = arith.constant 0 : index
    %104 = vector.load %arg3[%c112, %c0_61] : memref<200x8xbf16, #tpu.memory_space<vmem>>, vector<8x8xbf16>
    %cst_62 = arith.constant dense<0.000000e+00> : vector<8x128xf32>
    %105 = tpu.matmul %104, %103, %cst_62 {dimension_numbers = #tpu.dot_dimension_numbers<[1], [0], [0], [1], [0, 0, 1, 1], [], []>} : vector<8x8xbf16>, vector<8x128xbf16>, vector<8x128xf32> -> vector<8x128xf32>
    %106 = arith.addf %99, %105 : vector<8x128xf32>
    %c0_63 = arith.constant 0 : index
    %c1920 = arith.constant 1920 : index
    %107 = vector.load %arg1[%c0_63, %c1920] : memref<32x3200xbf16, #tpu.memory_space<vmem>>, vector<32x128xbf16>
    %cst_64 = arith.constant dense<0.000000e+00> : vector<8x128xf32>
    %108 = tpu.matmul %0, %107, %cst_64 {dimension_numbers = #tpu.dot_dimension_numbers<[1], [0], [0], [1], [0, 0, 1, 1], [], []>} : vector<8x32xbf16>, vector<32x128xbf16>, vector<8x128xf32> -> vector<8x128xf32>
    %109 = math.tanh %108 : vector<8x128xf32>
    %110 = arith.truncf %109 : vector<8x128xf32> to vector<8x128xbf16>
    %c120 = arith.constant 120 : index
    %c0_65 = arith.constant 0 : index
    %111 = vector.load %arg3[%c120, %c0_65] : memref<200x8xbf16, #tpu.memory_space<vmem>>, vector<8x8xbf16>
    %cst_66 = arith.constant dense<0.000000e+00> : vector<8x128xf32>
    %112 = tpu.matmul %111, %110, %cst_66 {dimension_numbers = #tpu.dot_dimension_numbers<[1], [0], [0], [1], [0, 0, 1, 1], [], []>} : vector<8x8xbf16>, vector<8x128xbf16>, vector<8x128xf32> -> vector<8x128xf32>
    %113 = arith.addf %106, %112 : vector<8x128xf32>
    %c0_67 = arith.constant 0 : index
    %c2048 = arith.constant 2048 : index
    %114 = vector.load %arg1[%c0_67, %c2048] : memref<32x3200xbf16, #tpu.memory_space<vmem>>, vector<32x128xbf16>
    %cst_68 = arith.constant dense<0.000000e+00> : vector<8x128xf32>
    %115 = tpu.matmul %0, %114, %cst_68 {dimension_numbers = #tpu.dot_dimension_numbers<[1], [0], [0], [1], [0, 0, 1, 1], [], []>} : vector<8x32xbf16>, vector<32x128xbf16>, vector<8x128xf32> -> vector<8x128xf32>
    %116 = math.tanh %115 : vector<8x128xf32>
    %117 = arith.truncf %116 : vector<8x128xf32> to vector<8x128xbf16>
    %c128_69 = arith.constant 128 : index
    %c0_70 = arith.constant 0 : index
    %118 = vector.load %arg3[%c128_69, %c0_70] : memref<200x8xbf16, #tpu.memory_space<vmem>>, vector<8x8xbf16>
    %cst_71 = arith.constant dense<0.000000e+00> : vector<8x128xf32>
    %119 = tpu.matmul %118, %117, %cst_71 {dimension_numbers = #tpu.dot_dimension_numbers<[1], [0], [0], [1], [0, 0, 1, 1], [], []>} : vector<8x8xbf16>, vector<8x128xbf16>, vector<8x128xf32> -> vector<8x128xf32>
    %120 = arith.addf %113, %119 : vector<8x128xf32>
    %c0_72 = arith.constant 0 : index
    %c2176 = arith.constant 2176 : index
    %121 = vector.load %arg1[%c0_72, %c2176] : memref<32x3200xbf16, #tpu.memory_space<vmem>>, vector<32x128xbf16>
    %cst_73 = arith.constant dense<0.000000e+00> : vector<8x128xf32>
    %122 = tpu.matmul %0, %121, %cst_73 {dimension_numbers = #tpu.dot_dimension_numbers<[1], [0], [0], [1], [0, 0, 1, 1], [], []>} : vector<8x32xbf16>, vector<32x128xbf16>, vector<8x128xf32> -> vector<8x128xf32>
    %123 = math.tanh %122 : vector<8x128xf32>
    %124 = arith.truncf %123 : vector<8x128xf32> to vector<8x128xbf16>
    %c136 = arith.constant 136 : index
    %c0_74 = arith.constant 0 : index
    %125 = vector.load %arg3[%c136, %c0_74] : memref<200x8xbf16, #tpu.memory_space<vmem>>, vector<8x8xbf16>
    %cst_75 = arith.constant dense<0.000000e+00> : vector<8x128xf32>
    %126 = tpu.matmul %125, %124, %cst_75 {dimension_numbers = #tpu.dot_dimension_numbers<[1], [0], [0], [1], [0, 0, 1, 1], [], []>} : vector<8x8xbf16>, vector<8x128xbf16>, vector<8x128xf32> -> vector<8x128xf32>
    %127 = arith.addf %120, %126 : vector<8x128xf32>
    %c0_76 = arith.constant 0 : index
    %c2304 = arith.constant 2304 : index
    %128 = vector.load %arg1[%c0_76, %c2304] : memref<32x3200xbf16, #tpu.memory_space<vmem>>, vector<32x128xbf16>
    %cst_77 = arith.constant dense<0.000000e+00> : vector<8x128xf32>
    %129 = tpu.matmul %0, %128, %cst_77 {dimension_numbers = #tpu.dot_dimension_numbers<[1], [0], [0], [1], [0, 0, 1, 1], [], []>} : vector<8x32xbf16>, vector<32x128xbf16>, vector<8x128xf32> -> vector<8x128xf32>
    %130 = math.tanh %129 : vector<8x128xf32>
    %131 = arith.truncf %130 : vector<8x128xf32> to vector<8x128xbf16>
    %c144 = arith.constant 144 : index
    %c0_78 = arith.constant 0 : index
    %132 = vector.load %arg3[%c144, %c0_78] : memref<200x8xbf16, #tpu.memory_space<vmem>>, vector<8x8xbf16>
    %cst_79 = arith.constant dense<0.000000e+00> : vector<8x128xf32>
    %133 = tpu.matmul %132, %131, %cst_79 {dimension_numbers = #tpu.dot_dimension_numbers<[1], [0], [0], [1], [0, 0, 1, 1], [], []>} : vector<8x8xbf16>, vector<8x128xbf16>, vector<8x128xf32> -> vector<8x128xf32>
    %134 = arith.addf %127, %133 : vector<8x128xf32>
    %c0_80 = arith.constant 0 : index
    %c2432 = arith.constant 2432 : index
    %135 = vector.load %arg1[%c0_80, %c2432] : memref<32x3200xbf16, #tpu.memory_space<vmem>>, vector<32x128xbf16>
    %cst_81 = arith.constant dense<0.000000e+00> : vector<8x128xf32>
    %136 = tpu.matmul %0, %135, %cst_81 {dimension_numbers = #tpu.dot_dimension_numbers<[1], [0], [0], [1], [0, 0, 1, 1], [], []>} : vector<8x32xbf16>, vector<32x128xbf16>, vector<8x128xf32> -> vector<8x128xf32>
    %137 = math.tanh %136 : vector<8x128xf32>
    %138 = arith.truncf %137 : vector<8x128xf32> to vector<8x128xbf16>
    %c152 = arith.constant 152 : index
    %c0_82 = arith.constant 0 : index
    %139 = vector.load %arg3[%c152, %c0_82] : memref<200x8xbf16, #tpu.memory_space<vmem>>, vector<8x8xbf16>
    %cst_83 = arith.constant dense<0.000000e+00> : vector<8x128xf32>
    %140 = tpu.matmul %139, %138, %cst_83 {dimension_numbers = #tpu.dot_dimension_numbers<[1], [0], [0], [1], [0, 0, 1, 1], [], []>} : vector<8x8xbf16>, vector<8x128xbf16>, vector<8x128xf32> -> vector<8x128xf32>
    %141 = arith.addf %134, %140 : vector<8x128xf32>
    %c0_84 = arith.constant 0 : index
    %c2560 = arith.constant 2560 : index
    %142 = vector.load %arg1[%c0_84, %c2560] : memref<32x3200xbf16, #tpu.memory_space<vmem>>, vector<32x128xbf16>
    %cst_85 = arith.constant dense<0.000000e+00> : vector<8x128xf32>
    %143 = tpu.matmul %0, %142, %cst_85 {dimension_numbers = #tpu.dot_dimension_numbers<[1], [0], [0], [1], [0, 0, 1, 1], [], []>} : vector<8x32xbf16>, vector<32x128xbf16>, vector<8x128xf32> -> vector<8x128xf32>
    %144 = math.tanh %143 : vector<8x128xf32>
    %145 = arith.truncf %144 : vector<8x128xf32> to vector<8x128xbf16>
    %c160 = arith.constant 160 : index
    %c0_86 = arith.constant 0 : index
    %146 = vector.load %arg3[%c160, %c0_86] : memref<200x8xbf16, #tpu.memory_space<vmem>>, vector<8x8xbf16>
    %cst_87 = arith.constant dense<0.000000e+00> : vector<8x128xf32>
    %147 = tpu.matmul %146, %145, %cst_87 {dimension_numbers = #tpu.dot_dimension_numbers<[1], [0], [0], [1], [0, 0, 1, 1], [], []>} : vector<8x8xbf16>, vector<8x128xbf16>, vector<8x128xf32> -> vector<8x128xf32>
    %148 = arith.addf %141, %147 : vector<8x128xf32>
    %c0_88 = arith.constant 0 : index
    %c2688 = arith.constant 2688 : index
    %149 = vector.load %arg1[%c0_88, %c2688] : memref<32x3200xbf16, #tpu.memory_space<vmem>>, vector<32x128xbf16>
    %cst_89 = arith.constant dense<0.000000e+00> : vector<8x128xf32>
    %150 = tpu.matmul %0, %149, %cst_89 {dimension_numbers = #tpu.dot_dimension_numbers<[1], [0], [0], [1], [0, 0, 1, 1], [], []>} : vector<8x32xbf16>, vector<32x128xbf16>, vector<8x128xf32> -> vector<8x128xf32>
    %151 = math.tanh %150 : vector<8x128xf32>
    %152 = arith.truncf %151 : vector<8x128xf32> to vector<8x128xbf16>
    %c168 = arith.constant 168 : index
    %c0_90 = arith.constant 0 : index
    %153 = vector.load %arg3[%c168, %c0_90] : memref<200x8xbf16, #tpu.memory_space<vmem>>, vector<8x8xbf16>
    %cst_91 = arith.constant dense<0.000000e+00> : vector<8x128xf32>
    %154 = tpu.matmul %153, %152, %cst_91 {dimension_numbers = #tpu.dot_dimension_numbers<[1], [0], [0], [1], [0, 0, 1, 1], [], []>} : vector<8x8xbf16>, vector<8x128xbf16>, vector<8x128xf32> -> vector<8x128xf32>
    %155 = arith.addf %148, %154 : vector<8x128xf32>
    %c0_92 = arith.constant 0 : index
    %c2816 = arith.constant 2816 : index
    %156 = vector.load %arg1[%c0_92, %c2816] : memref<32x3200xbf16, #tpu.memory_space<vmem>>, vector<32x128xbf16>
    %cst_93 = arith.constant dense<0.000000e+00> : vector<8x128xf32>
    %157 = tpu.matmul %0, %156, %cst_93 {dimension_numbers = #tpu.dot_dimension_numbers<[1], [0], [0], [1], [0, 0, 1, 1], [], []>} : vector<8x32xbf16>, vector<32x128xbf16>, vector<8x128xf32> -> vector<8x128xf32>
    %158 = math.tanh %157 : vector<8x128xf32>
    %159 = arith.truncf %158 : vector<8x128xf32> to vector<8x128xbf16>
    %c176 = arith.constant 176 : index
    %c0_94 = arith.constant 0 : index
    %160 = vector.load %arg3[%c176, %c0_94] : memref<200x8xbf16, #tpu.memory_space<vmem>>, vector<8x8xbf16>
    %cst_95 = arith.constant dense<0.000000e+00> : vector<8x128xf32>
    %161 = tpu.matmul %160, %159, %cst_95 {dimension_numbers = #tpu.dot_dimension_numbers<[1], [0], [0], [1], [0, 0, 1, 1], [], []>} : vector<8x8xbf16>, vector<8x128xbf16>, vector<8x128xf32> -> vector<8x128xf32>
    %162 = arith.addf %155, %161 : vector<8x128xf32>
    %c0_96 = arith.constant 0 : index
    %c2944 = arith.constant 2944 : index
    %163 = vector.load %arg1[%c0_96, %c2944] : memref<32x3200xbf16, #tpu.memory_space<vmem>>, vector<32x128xbf16>
    %cst_97 = arith.constant dense<0.000000e+00> : vector<8x128xf32>
    %164 = tpu.matmul %0, %163, %cst_97 {dimension_numbers = #tpu.dot_dimension_numbers<[1], [0], [0], [1], [0, 0, 1, 1], [], []>} : vector<8x32xbf16>, vector<32x128xbf16>, vector<8x128xf32> -> vector<8x128xf32>
    %165 = math.tanh %164 : vector<8x128xf32>
    %166 = arith.truncf %165 : vector<8x128xf32> to vector<8x128xbf16>
    %c184 = arith.constant 184 : index
    %c0_98 = arith.constant 0 : index
    %167 = vector.load %arg3[%c184, %c0_98] : memref<200x8xbf16, #tpu.memory_space<vmem>>, vector<8x8xbf16>
    %cst_99 = arith.constant dense<0.000000e+00> : vector<8x128xf32>
    %168 = tpu.matmul %167, %166, %cst_99 {dimension_numbers = #tpu.dot_dimension_numbers<[1], [0], [0], [1], [0, 0, 1, 1], [], []>} : vector<8x8xbf16>, vector<8x128xbf16>, vector<8x128xf32> -> vector<8x128xf32>
    %169 = arith.addf %162, %168 : vector<8x128xf32>
    %c0_100 = arith.constant 0 : index
    %c3072 = arith.constant 3072 : index
    %170 = vector.load %arg1[%c0_100, %c3072] : memref<32x3200xbf16, #tpu.memory_space<vmem>>, vector<32x128xbf16>
    %cst_101 = arith.constant dense<0.000000e+00> : vector<8x128xf32>
    %171 = tpu.matmul %0, %170, %cst_101 {dimension_numbers = #tpu.dot_dimension_numbers<[1], [0], [0], [1], [0, 0, 1, 1], [], []>} : vector<8x32xbf16>, vector<32x128xbf16>, vector<8x128xf32> -> vector<8x128xf32>
    %172 = math.tanh %171 : vector<8x128xf32>
    %173 = arith.truncf %172 : vector<8x128xf32> to vector<8x128xbf16>
    %c192 = arith.constant 192 : index
    %c0_102 = arith.constant 0 : index
    %174 = vector.load %arg3[%c192, %c0_102] : memref<200x8xbf16, #tpu.memory_space<vmem>>, vector<8x8xbf16>
    %cst_103 = arith.constant dense<0.000000e+00> : vector<8x128xf32>
    %175 = tpu.matmul %174, %173, %cst_103 {dimension_numbers = #tpu.dot_dimension_numbers<[1], [0], [0], [1], [0, 0, 1, 1], [], []>} : vector<8x8xbf16>, vector<8x128xbf16>, vector<8x128xf32> -> vector<8x128xf32>
    %176 = arith.addf %169, %175 : vector<8x128xf32>
    %c0_104 = arith.constant 0 : index
    %c0_105 = arith.constant 0 : index
    %177 = vector.load %arg4[%c0_104, %c0_105] : memref<8x1xf32, #tpu.memory_space<vmem>>, vector<8x1xf32>
    %178 = vector.broadcast %177 : vector<8x1xf32> to vector<8x128xf32>
    %179 = arith.addf %176, %178 : vector<8x128xf32>
    %180 = math.tanh %179 : vector<8x128xf32>
    %c0_106 = arith.constant 0 : index
    %c0_107 = arith.constant 0 : index
    %181 = vector.load %arg5[%c0_106, %c0_107] : memref<8x128xf32, #tpu.memory_space<vmem>>, vector<8x128xf32>
    tpu.vector_store %arg5[%c0_106, %c0_107], %180 {strides = array<i32>} : memref<8x128xf32, #tpu.memory_space<vmem>>, vector<8x128xf32>,
    return
  }
  func.func @transform_0(%arg0: i32) -> (i32, i32) {
    %c0_i32 = arith.constant 0 : i32
    %c0_i32_0 = arith.constant 0 : i32
    return %c0_i32, %arg0 : i32, i32
  }
  func.func @transform_1(%arg0: i32) -> (i32, i32) {
    %c0_i32 = arith.constant 0 : i32
    %c0_i32_0 = arith.constant 0 : i32
    %c0_i32_1 = arith.constant 0 : i32
    return %c0_i32, %c0_i32_0 : i32, i32
  }
  func.func @transform_2(%arg0: i32) -> (i32, i32) {
    %c0_i32 = arith.constant 0 : i32
    %c0_i32_0 = arith.constant 0 : i32
    %c0_i32_1 = arith.constant 0 : i32
    return %c0_i32, %c0_i32_0 : i32, i32
  }
  func.func @transform_3(%arg0: i32) -> (i32, i32) {
    %c0_i32 = arith.constant 0 : i32
    %c0_i32_0 = arith.constant 0 : i32
    %c0_i32_1 = arith.constant 0 : i32
    return %c0_i32, %c0_i32_0 : i32, i32
  }
  func.func @transform_4(%arg0: i32) -> (i32, i32) {
    %c0_i32 = arith.constant 0 : i32
    %c0_i32_0 = arith.constant 0 : i32
    return %c0_i32, %arg0 : i32, i32
  }
}

</mosaic_0001>

<bundles_post_ra>
// kernel: encoder_forward.1
= control target key start
LH: loop header
LB: loop body
LE: loop exit
PB: predicated region body
PF: predicated region fallthrough
CT: control target
= control target key end

     0   :  { %vm35_vm0 = vcmask 261120   ;;  %vm91_vm1 = vcmask 1043456   ;;  %vm87_vm2 = vcmask 64512   ;;  %s2205_s0 = inlined_call_operand.vmem [shape: bf16[32,3200], index: 0, kind: input, shape index: {}]   ;;  %s2206_s1 = inlined_call_operand.vmem [shape: bf16[8,32], index: 1, kind: input, shape index: {}]   ;;  %s2207_s2 = inlined_call_operand.vmem [shape: bf16[200,8], index: 2, kind: input, shape index: {}]   ;;  %s2208_s3 = inlined_call_operand.vmem [shape: f32[8,1], index: 3, kind: input, shape index: {}]   ;;  %s2209_s4 = inlined_call_operand.vmem [shape: f32[8,128], index: 4, kind: output, shape index: {}]  }
   0x1   :  { %v1342_v0 = vld [vmem:[%s2205_s0 + $0xc8] sm:$0xf]  ;;  %v1587_v1 = vld [vmem:[%s2205_s0 + $0x128] sm:$0xf0]  ;;  %v1589_v4 = vld [vmem:[%s2205_s0 + $0x12c] sm:$0xf0] }
   0x2   :  { %v1351_v2 = vld [vmem:[%s2205_s0 + $0xcc] sm:$0xf]  ;;  %v1343_v3 = vor.u32 %v1587_v1, %v1342_v0  ;;  %v1338_v5 = vld [vmem:[%s2205_s0] sm:$0xf]  ;;  %v1586_v6 = vld [vmem:[%s2205_s0 + $0x60] sm:$0xf0] }
   0x3   :  { %v1352_v7 = vor.u32 %v1589_v4, %v1351_v2  ;;  %v1347_v8 = vld [vmem:[%s2205_s0 + $0x4] sm:$0xf]  ;;  %v1588_v9 = vld [vmem:[%s2205_s0 + $0x64] sm:$0xf0]  ;;  %v1339_v10 = vor.u32 %v1586_v6, %v1338_v5  ;;  %v1743_v12 = vld [vmem:[%s2206_s1] sm:$0xf] }
   0x4   :  { %45 = vmatpush.bf16.msra.mxu0 %v1343_v3  ;;  %v1348_v11 = vor.u32 %v1588_v9, %v1347_v8  ;;  %v1372_v13 = vld [vmem:[%s2205_s0 + $0xd4] sm:$0xf]  ;;  %v1593_v14 = vld [vmem:[%s2205_s0 + $0x134] sm:$0xf0]  ;;  %v1368_v17 = vld [vmem:[%s2205_s0 + $0xc] sm:$0xf] }
   0x5   :  { %77 = vmatpush.bf16.msra.mxu1 %v1352_v7  ;;  %v1373_v16 = vor.u32 %v1593_v14, %v1372_v13  ;;  %v1592_v18 = vld [vmem:[%s2205_s0 + $0x6c] sm:$0xf0]  ;;  %v1591_v22 = vld [vmem:[%s2205_s0 + $0x130] sm:$0xf0]  ;;  %v54_v29 = vld [vmem:[%s2207_s2] sm:$0xf] }
   0x6   :  { %v1369_v20 = vor.u32 %v1592_v18, %v1368_v17  ;;  %v1362_v21 = vld [vmem:[%s2205_s0 + $0xd0] sm:$0xf]  ;;  %v1358_v32 = vld [vmem:[%s2205_s0 + $0x8] sm:$0xf]  ;;  %v1590_v33 = vld [vmem:[%s2205_s0 + $0x68] sm:$0xf0] }
   0x7   :  { %v1363_v30 = vor.u32 %v1591_v22, %v1362_v21  ;;  %v1382_v35 = vld [vmem:[%s2205_s0 + $0xd8] sm:$0xf]  ;;  %v1595_v36 = vld [vmem:[%s2205_s0 + $0x138] sm:$0xf0]  ;;  %v86_v37 = vld [vmem:[%s2207_s2 + $0x4] sm:$0xf]  ;;  %v1359_v38 = vor.u32 %v1590_v33, %v1358_v32 }
   0x8   :  { %46 = vmatpush.bf16.msra.mxu0 %v1339_v10  ;;  %v1383_v39 = vor.u32 %v1595_v36, %v1382_v35  ;;  %v1378_v40 = vld [vmem:[%s2205_s0 + $0x10] sm:$0xf]  ;;  %v1594_v41 = vld [vmem:[%s2205_s0 + $0x70] sm:$0xf0]  ;;  %v1392_v42 = vld [vmem:[%s2205_s0 + $0xdc] sm:$0xf] }
   0x9   :  { %78 = vmatpush.bf16.msra.mxu1 %v1348_v11  ;;  %v1597_v43 = vld [vmem:[%s2205_s0 + $0x13c] sm:$0xf0]  ;;  %v1388_v45 = vld [vmem:[%s2205_s0 + $0x14] sm:$0xf]  ;;  %v1596_v46 = vld [vmem:[%s2205_s0 + $0x74] sm:$0xf0]  ;;  %v1379_v47 = vor.u32 %v1594_v41, %v1378_v40 }
   0xa   :  { %v1393_v44 = vor.u32 %v1597_v43, %v1392_v42  ;;  %v1389_v48 = vor.u32 %v1596_v46, %v1388_v45  ;;  %v1402_v49 = vld [vmem:[%s2205_s0 + $0xe0] sm:$0xf]  ;;  %v1599_v50 = vld [vmem:[%s2205_s0 + $0x140] sm:$0xf0]  ;;  %v1398_v52 = vld [vmem:[%s2205_s0 + $0x18] sm:$0xf] }
   0xb   :  { %1344 = vmatmul.msk.bf16.vlgmr.msra.gmra.mxu0 %vm35_vm0, %v1743_v12  ;;  %v1403_v51 = vor.u32 %v1599_v50, %v1402_v49  ;;  %v1598_v53 = vld [vmem:[%s2205_s0 + $0x78] sm:$0xf0]  ;;  %v1412_v54 = vld [vmem:[%s2205_s0 + $0xe4] sm:$0xf]  ;;  %v1601_v55 = vld [vmem:[%s2205_s0 + $0x144] sm:$0xf0] }
   0xc   :  { %1353 = vmatmul.msk.bf16.vlgmr.msra.gmra.mxu1 %vm35_vm0, %v1743_v12  ;;  %201 = vmatpush.bf16.msrb.mxu0 %v1373_v16  ;;  %v1399_v56 = vor.u32 %v1598_v53, %v1398_v52  ;;  %v1413_v57 = vor.u32 %v1601_v55, %v1412_v54  ;;  %v1408_v58 = vld [vmem:[%s2205_s0 + $0x1c] sm:$0xf]  ;;  %v1600_v59 = vld [vmem:[%s2205_s0 + $0x7c] sm:$0xf0]  ;;  %v1422_v61 = vld [vmem:[%s2205_s0 + $0xe8] sm:$0xf] }
   0xd   :  { %v1409_v60 = vor.u32 %v1600_v59, %v1408_v58  ;;  %v1603_v62 = vld [vmem:[%s2205_s0 + $0x148] sm:$0xf0]  ;;  %v1418_v0 = vld [vmem:[%s2205_s0 + $0x20] sm:$0xf]  ;;  %v1602_v1 = vld [vmem:[%s2205_s0 + $0x80] sm:$0xf0] }
   0xe   :  { %v1423_v63 = vor.u32 %v1603_v62, %v1422_v61  ;;  %v1432_v2 = vld [vmem:[%s2205_s0 + $0xec] sm:$0xf]  ;;  %v1605_v3 = vld [vmem:[%s2205_s0 + $0x14c] sm:$0xf0]  ;;  %v1419_v4 = vor.u32 %v1602_v1, %v1418_v0  ;;  %v1428_v6 = vld [vmem:[%s2205_s0 + $0x24] sm:$0xf] }
   0xf   :  { %v1433_v5 = vor.u32 %v1605_v3, %v1432_v2  ;;  %v1604_v7 = vld [vmem:[%s2205_s0 + $0x84] sm:$0xf0]  ;;  %v1442_v9 = vld [vmem:[%s2205_s0 + $0xf0] sm:$0xf]  ;;  %v1607_v10 = vld [vmem:[%s2205_s0 + $0x150] sm:$0xf0] }
  0x10   :  { %202 = vmatpush.bf16.msrb.mxu0 %v1369_v20  ;;  %v1429_v8 = vor.u32 %v1604_v7, %v1428_v6  ;;  %v1443_v11 = vor.u32 %v1607_v10, %v1442_v9  ;;  %v1438_v13 = vld [vmem:[%s2205_s0 + $0x28] sm:$0xf]  ;;  %v1606_v14 = vld [vmem:[%s2205_s0 + $0x88] sm:$0xf0]  ;;  %v1609_v16 = vld [vmem:[%s2205_s0 + $0x154] sm:$0xf0] }
  0x11   :  { %v1439_v17 = vor.u32 %v1606_v14, %v1438_v13  ;;  %v1608_v20 = vld [vmem:[%s2205_s0 + $0x8c] sm:$0xf0]  ;;  %v1462_v22 = vld [vmem:[%s2205_s0 + $0xf8] sm:$0xf]  ;;  %v1615_v35 = vld [vmem:[%s2205_s0 + $0x160] sm:$0xf0] }
  0x12   :  { %v1612_v32 = vld [vmem:[%s2205_s0 + $0x94] sm:$0xf0]  ;;  %v1617_v40 = vld [vmem:[%s2205_s0 + $0x164] sm:$0xf0]  ;;  %v1488_v43 = vld [vmem:[%s2205_s0 + $0x3c] sm:$0xf] }
  0x13   :  { %v1502_v46 = vld [vmem:[%s2205_s0 + $0x108] sm:$0xf]  ;;  %v1498_v49 = vld [vmem:[%s2205_s0 + $0x40] sm:$0xf]  ;;  %v1618_v50 = vld [vmem:[%s2205_s0 + $0xa0] sm:$0xf0] }
  0x14   :  { %305 = vmatpush.bf16.msra.mxu0 %v1393_v44  ;;  %v1616_v44 = vld [vmem:[%s2205_s0 + $0x9c] sm:$0xf0]  ;;  %v1512_v52 = vld [vmem:[%s2205_s0 + $0x10c] sm:$0xf]  ;;  %v1621_v53 = vld [vmem:[%s2205_s0 + $0x16c] sm:$0xf0] }
  0x15   :  { %v1489_v45 = vor.u32 %v1616_v44, %v1488_v43  ;;  %v1513_v54 = vor.u32 %v1621_v53, %v1512_v52  ;;  %v1508_v55 = vld [vmem:[%s2205_s0 + $0x44] sm:$0xf]  ;;  %v1522_v58 = vld [vmem:[%s2205_s0 + $0x110] sm:$0xf]  ;;  %v1623_v59 = vld [vmem:[%s2205_s0 + $0x170] sm:$0xf0] }
  0x16   :  { %v1518_v61 = vld [vmem:[%s2205_s0 + $0x48] sm:$0xf]  ;;  %v1622_v62 = vld [vmem:[%s2205_s0 + $0xa8] sm:$0xf0]  ;;  %v1532_v0 = vld [vmem:[%s2205_s0 + $0x114] sm:$0xf] }
  0x17   :  { %v1625_v1 = vld [vmem:[%s2205_s0 + $0x174] sm:$0xf0]  ;;  %v1528_v3 = vld [vmem:[%s2205_s0 + $0x4c] sm:$0xf]  ;;  %v1627_v7 = vld [vmem:[%s2205_s0 + $0x178] sm:$0xf0] }
  0x18   :  { %306 = vmatpush.bf16.msra.mxu0 %v1389_v48  ;;  %v1533_v2 = vor.u32 %v1625_v1, %v1532_v0  ;;  %v1542_v6 = vld [vmem:[%s2205_s0 + $0x118] sm:$0xf]  ;;  %v1538_v10 = vld [vmem:[%s2205_s0 + $0x50] sm:$0xf] }
  0x19   :  { %v1543_v9 = vor.u32 %v1627_v7, %v1542_v6 }
  0x1b   :  { %1374 = vmatmul.msk.bf16.vlgmr.msrb.gmra.mxu0 %vm35_vm0, %v1743_v12 }
  0x1c   :  { %409 = vmatpush.bf16.msrb.mxu0 %v1413_v57 }
  0x20   :  { %410 = vmatpush.bf16.msrb.mxu0 %v1409_v60  ;;  %v1523_v60 = vor.u32 %v1623_v59, %v1522_v58  ;;  %v1578_v58 = vld [vmem:[%s2205_s0 + $0x60] sm:$0xf]  ;;  %v1634_v59 = vld [vmem:[%s2205_s0 + $0xc0] sm:$0xf0] }
  0x2b   :  { %1394 = vmatmul.msk.bf16.vlgmr.msra.gmra.mxu0 %vm35_vm0, %v1743_v12 }
  0x2c   :  { %513 = vmatpush.bf16.msra.mxu0 %v1433_v5 }
  0x30   :  { %514 = vmatpush.bf16.msra.mxu0 %v1429_v8 }
  0x3b   :  { %1414 = vmatmul.msk.bf16.vlgmr.msrb.gmra.mxu0 %vm35_vm0, %v1743_v12 }
  0x4b   :  { %1434 = vmatmul.msk.bf16.vlgmr.msra.gmra.mxu0 %vm35_vm0, %v1743_v12 }
  0x88   :  { %v48_v15 = vpop.f32.mrf.mxu0 }
  0x89   :  { %1638 = vtanh.f32 %v48_v15  ;;  %v80_v19 = vpop.f32.mrf.mxu1  ;;  %v1452_v15 = vld [vmem:[%s2205_s0 + $0xf4] sm:$0xf] }
  0x8a   :  { %1640 = vtanh.f32 %v80_v19  ;;  %v1453_v18 = vor.u32 %v1609_v16, %v1452_v15  ;;  %v1448_v19 = vld [vmem:[%s2205_s0 + $0x2c] sm:$0xf] }
  0x8b   :  { %v1449_v21 = vor.u32 %v1608_v20, %v1448_v19  ;;  %v1552_v20 = vld [vmem:[%s2205_s0 + $0x11c] sm:$0xf] }
  0x8c   :  { %617 = vmatpush.bf16.msrb.mxu0 %v1453_v18 }
  0x8f   :  { %v1639_v23 = vpop.eup %1638 }
  0x90   :  { %v1641_v24 = vpop.eup %1640  ;;  %v53_v25 = vpack.c.bf16 %v1639_v23, %v1639_v23  ;;  %v50_v26 = vpop.f32.mrf.mxu0  ;;  %618 = vmatpush.bf16.msrb.mxu0 %v1449_v21  ;;  %v1611_v23 = vld [vmem:[%s2205_s0 + $0x158] sm:$0xf0]  ;;  %v1629_v21 = vld [vmem:[%s2205_s0 + $0x17c] sm:$0xf0] }
  0x91   :  { %v82_v27 = vpop.f32.mrf.mxu1  ;;  %v85_v28 = vpack.c.bf16 %v1641_v24, %v1641_v24  ;;  %v1463_v24 = vor.u32 %v1611_v23, %v1462_v22  ;;  %v1610_v26 = vld [vmem:[%s2205_s0 + $0x90] sm:$0xf0]  ;;  %v1553_v23 = vor.u32 %v1629_v21, %v1552_v20 }
  0x92   :  { %v112_v31 = vsel %vm91_vm1, %v53_v25, 0  ;;  %v1458_v25 = vld [vmem:[%s2205_s0 + $0x30] sm:$0xf]  ;;  %v1472_v27 = vld [vmem:[%s2205_s0 + $0xfc] sm:$0xf] }
  0x93   :  { %v93_v34 = vsel %vm91_vm1, %v85_v28, 0  ;;  %121 = vmatpush.bf16.msra.mxu3 %v112_v31  ;;  %1454 = vmatmul.msk.bf16.vlgmr.msrb.gmra.mxu0 %vm35_vm0, %v1743_v12  ;;  %v1613_v28 = vld [vmem:[%s2205_s0 + $0x15c] sm:$0xf0]  ;;  %v1468_v31 = vld [vmem:[%s2205_s0 + $0x34] sm:$0xf] }
  0x94   :  { %102 = vmatpush.bf16.msra.mxu2 %v93_v34  ;;  %v1469_v33 = vor.u32 %v1612_v32, %v1468_v31  ;;  %v1482_v34 = vld [vmem:[%s2205_s0 + $0x100] sm:$0xf] }
  0x95   :  { %v1483_v36 = vor.u32 %v1615_v35, %v1482_v34  ;;  %v1558_v34 = vld [vmem:[%s2205_s0 + $0x58] sm:$0xf]  ;;  %v1630_v35 = vld [vmem:[%s2205_s0 + $0xb8] sm:$0xf0] }
  0x96   :  { %1355 = vmatmul.msk.bf16.vlgmr.msra.gmra.mxu3 %vm87_vm2, %v54_v29  ;;  %v1459_v29 = vor.u32 %v1610_v26, %v1458_v25  ;;  %v1548_v25 = vld [vmem:[%s2205_s0 + $0x54] sm:$0xf]  ;;  %v1628_v26 = vld [vmem:[%s2205_s0 + $0xb4] sm:$0xf0] }
  0x97   :  { %1354 = vmatmul.msk.bf16.vlgmr.msra.gmra.mxu2 %vm87_vm2, %v86_v37  ;;  %v1478_v37 = vld [vmem:[%s2205_s0 + $0x38] sm:$0xf] }
  0x98   :  { %149 = vmatpush.bf16.msrb.mxu2 %v1363_v30  ;;  %v1473_v30 = vor.u32 %v1613_v28, %v1472_v27  ;;  %v204_v8 = vpop.f32.mrf.mxu0  ;;  %v1549_v27 = vor.u32 %v1628_v26, %v1548_v25  ;;  %v1562_v28 = vld [vmem:[%s2205_s0 + $0x120] sm:$0xf] }
  0x99   :  { %1642 = vtanh.f32 %v204_v8  ;;  %v262_v8 = vld [vmem:[%s2207_s2 + $0x10] sm:$0xf] }
  0x9a   :  { %721 = vmatpush.bf16.msra.mxu0 %v1473_v30 }
  0x9c   :  { %150 = vmatpush.bf16.msrb.mxu2 %v1359_v38  ;;  %v1614_v38 = vld [vmem:[%s2205_s0 + $0x98] sm:$0xf0] }
  0x9d   :  { %v1479_v41 = vor.u32 %v1614_v38, %v1478_v37 }
  0x9e   :  { %722 = vmatpush.bf16.msra.mxu0 %v1469_v33 }
  0x9f   :  { %v1643_v14 = vpop.eup %1642 }
  0xa0   :  { %253 = vmatpush.bf16.msra.mxu2 %v1383_v39  ;;  %v1492_v39 = vld [vmem:[%s2205_s0 + $0x104] sm:$0xf]  ;;  %v206_v18 = vpop.f32.mrf.mxu0 }
  0xa1   :  { %v1493_v42 = vor.u32 %v1617_v40, %v1492_v39 }
  0xa3   :  { %1474 = vmatmul.msk.bf16.vlgmr.msra.gmra.mxu0 %vm35_vm0, %v1743_v12 }
  0xa4   :  { %254 = vmatpush.bf16.msra.mxu2 %v1379_v47  ;;  %825 = vmatpush.bf16.msrb.mxu0 %v1493_v42  ;;  %v1619_v47 = vld [vmem:[%s2205_s0 + $0x168] sm:$0xf0]  ;;  %v1633_v42 = vld [vmem:[%s2205_s0 + $0x184] sm:$0xf0] }
  0xa5   :  { %v1503_v48 = vor.u32 %v1619_v47, %v1502_v46  ;;  %v1568_v46 = vld [vmem:[%s2205_s0 + $0x5c] sm:$0xf]  ;;  %v1632_v47 = vld [vmem:[%s2205_s0 + $0xbc] sm:$0xf0] }
  0xa7   :  { %1364 = vmatmul.msk.bf16.vlgmr.msrb.gmra.mxu2 %vm35_vm0, %v1743_v12 }
  0xa8   :  { %357 = vmatpush.bf16.msrb.mxu2 %v1403_v51  ;;  %826 = vmatpush.bf16.msrb.mxu0 %v1489_v45  ;;  %v1499_v51 = vor.u32 %v1618_v50, %v1498_v49  ;;  %v308_v32 = vpop.f32.mrf.mxu0  ;;  %v314_v45 = vld [vmem:[%s2207_s2 + $0x14] sm:$0xf]  ;;  %v1582_v50 = vld [vmem:[%s2205_s0 + $0x128] sm:$0xf] }
  0xa9   :  { %1644 = vtanh.f32 %v308_v32 }
  0xac   :  { %358 = vmatpush.bf16.msrb.mxu2 %v1399_v56  ;;  %929 = vmatpush.bf16.msra.mxu0 %v1513_v54  ;;  %v1620_v56 = vld [vmem:[%s2205_s0 + $0xa4] sm:$0xf0] }
  0xad   :  { %v1509_v57 = vor.u32 %v1620_v56, %v1508_v55 }
  0xaf   :  { %v1645_v37 = vpop.eup %1644 }
  0xb0   :  { %930 = vmatpush.bf16.msra.mxu0 %v1509_v57  ;;  %v313_v39 = vpack.c.bf16 %v1645_v37, %v1645_v37  ;;  %v310_v40 = vpop.f32.mrf.mxu0  ;;  %v158_v57 = vld [vmem:[%s2207_s2 + $0x8] sm:$0xf] }
  0xb2   :  { %v319_v43 = vsel %vm91_vm1, %v313_v39, 0  ;;  %v730_v39 = vld [vmem:[%s2207_s2 + $0x34] sm:$0xf] }
  0xb3   :  { %1494 = vmatmul.msk.bf16.vlgmr.msrb.gmra.mxu0 %vm35_vm0, %v1743_v12 }
  0xb4   :  { %1033 = vmatpush.bf16.msrb.mxu0 %v1533_v2  ;;  %v418_v2 = vld [vmem:[%s2207_s2 + $0x1c] sm:$0xf] }
  0xb7   :  { %1384 = vmatmul.msk.bf16.vlgmr.msra.gmra.mxu2 %vm35_vm0, %v1743_v12 }
  0xb8   :  { %461 = vmatpush.bf16.msra.mxu2 %v1423_v63  ;;  %v1519_v63 = vor.u32 %v1622_v62, %v1518_v61  ;;  %v412_v54 = vpop.f32.mrf.mxu0 }
  0xbc   :  { %462 = vmatpush.bf16.msra.mxu2 %v1419_v4  ;;  %v1624_v4 = vld [vmem:[%s2205_s0 + $0xac] sm:$0xf0] }
  0xbd   :  { %v1529_v5 = vor.u32 %v1624_v4, %v1528_v3 }
  0xbf   :  { %1034 = vmatpush.bf16.msrb.mxu0 %v1529_v5 }
  0xc0   :  { %v414_v0 = vpop.f32.mrf.mxu0 }
  0xc3   :  { %1514 = vmatmul.msk.bf16.vlgmr.msra.gmra.mxu0 %vm35_vm0, %v1743_v12 }
  0xc4   :  { %1137 = vmatpush.bf16.msra.mxu0 %v1553_v23 }
  0xc7   :  { %1404 = vmatmul.msk.bf16.vlgmr.msrb.gmra.mxu2 %vm35_vm0, %v1743_v12 }
  0xc8   :  { %565 = vmatpush.bf16.msrb.mxu2 %v1443_v11  ;;  %v1626_v11 = vld [vmem:[%s2205_s0 + $0xb0] sm:$0xf0]  ;;  %1138 = vmatpush.bf16.msra.mxu0 %v1549_v27  ;;  %v516_v6 = vpop.f32.mrf.mxu0 }
  0xc9   :  { %v1539_v13 = vor.u32 %v1626_v11, %v1538_v10 }
  0xcc   :  { %566 = vmatpush.bf16.msrb.mxu2 %v1439_v17  ;;  %v209_v17 = vpack.c.bf16 %v1643_v14, %v1643_v14 }
  0xce   :  { %v215_v22 = vsel %vm91_vm1, %v209_v17, 0 }
  0xcf   :  { %224 = vmatpush.bf16.msrb.mxu1 %v215_v22  ;;  %v366_v22 = vld [vmem:[%s2207_s2 + $0x18] sm:$0xf] }
  0xd3   :  { %1534 = vmatmul.msk.bf16.vlgmr.msrb.gmra.mxu0 %vm35_vm0, %v1743_v12  ;;  %328 = vmatpush.bf16.msra.mxu1 %v319_v43 }
  0xd7   :  { %1424 = vmatmul.msk.bf16.vlgmr.msra.gmra.mxu2 %vm35_vm0, %v1743_v12 }
  0xd8   :  { %669 = vmatpush.bf16.msra.mxu2 %v1463_v24  ;;  %v210_v24 = vld [vmem:[%s2207_s2 + $0xc] sm:$0xf] }
  0xd9   :  { %1375 = vmatmul.msk.bf16.vlgmr.msrb.gmra.mxu1 %vm87_vm2, %v210_v24 }
  0xdc   :  { %670 = vmatpush.bf16.msra.mxu2 %v1459_v29  ;;  %v1631_v29 = vld [vmem:[%s2205_s0 + $0x180] sm:$0xf0] }
  0xdd   :  { %v1563_v33 = vor.u32 %v1631_v29, %v1562_v28  ;;  %v626_v28 = vld [vmem:[%s2207_s2 + $0x2c] sm:$0xf] }
  0xe3   :  { %1554 = vmatmul.msk.bf16.vlgmr.msra.gmra.mxu0 %vm35_vm0, %v1743_v12 }
  0xe7   :  { %1444 = vmatmul.msk.bf16.vlgmr.msrb.gmra.mxu2 %vm35_vm0, %v1743_v12 }
  0xe8   :  { %773 = vmatpush.bf16.msrb.mxu2 %v1483_v36  ;;  %v1559_v36 = vor.u32 %v1630_v35, %v1558_v34 }
  0xe9   :  { %1395 = vmatmul.msk.bf16.vlgmr.msra.gmra.mxu1 %vm87_vm2, %v314_v45  ;;  %v574_v45 = vld [vmem:[%s2207_s2 + $0x28] sm:$0xf] }
  0xec   :  { %774 = vmatpush.bf16.msrb.mxu2 %v1479_v41  ;;  %v1572_v41 = vld [vmem:[%s2205_s0 + $0x124] sm:$0xf] }
  0xed   :  { %v1573_v44 = vor.u32 %v1633_v42, %v1572_v41 }
  0xef   :  { %1241 = vmatpush.bf16.msrb.mxu0 %v1573_v44 }
  0xf7   :  { %1464 = vmatmul.msk.bf16.vlgmr.msra.gmra.mxu2 %vm35_vm0, %v1743_v12 }
  0xf8   :  { %877 = vmatpush.bf16.msra.mxu2 %v1503_v48  ;;  %v1569_v48 = vor.u32 %v1632_v47, %v1568_v46 }
  0xfa   :  { %1242 = vmatpush.bf16.msrb.mxu0 %v1569_v48 }
  0xfc   :  { %878 = vmatpush.bf16.msra.mxu2 %v1499_v51  ;;  %v1635_v51 = vld [vmem:[%s2205_s0 + $0x188] sm:$0xf0] }
  0xfd   :  { %v1583_v56 = vor.u32 %v1635_v51, %v1582_v50  ;;  %1574 = vmatmul.msk.bf16.vlgmr.msrb.gmra.mxu0 %vm35_vm0, %v1743_v12  ;;  %v834_v51 = vld [vmem:[%s2207_s2 + $0x3c] sm:$0xf] }
 0x107   :  { %1484 = vmatmul.msk.bf16.vlgmr.msrb.gmra.mxu2 %vm35_vm0, %v1743_v12 }
 0x108   :  { %981 = vmatpush.bf16.msrb.mxu2 %v1523_v60  ;;  %v1579_v60 = vor.u32 %v1634_v59, %v1578_v58 }
 0x10c   :  { %982 = vmatpush.bf16.msrb.mxu2 %v1519_v63 }
 0x117   :  { %1504 = vmatmul.msk.bf16.vlgmr.msra.gmra.mxu2 %vm35_vm0, %v1743_v12 }
 0x118   :  { %1085 = vmatpush.bf16.msra.mxu2 %v1543_v9 }
 0x119   :  { %v123_v15 = vpop.f32.mrf.mxu3 }
 0x11a   :  { %v104_v16 = vpop.f32.mrf.mxu2 }
 0x11b   :  { %v2021_v19 = vadd.f32 %v123_v15, %v104_v16  ;;  %v522_v15 = vld [vmem:[%s2207_s2 + $0x24] sm:$0xf] }
 0x11c   :  { %1086 = vmatpush.bf16.msra.mxu2 %v1539_v13  ;;  %v518_v13 = vpop.f32.mrf.mxu0 }
 0x11d   :  { %v1042_v13 = vld [vmem:[%s2207_s2 + $0x4c] sm:$0xf] }
 0x121   :  { %v125_v30 = vpop.f32.mrf.mxu3 }
 0x122   :  { %v106_v31 = vpop.f32.mrf.mxu2 }
 0x124   :  { %v620_v20 = vpop.f32.mrf.mxu0 }
 0x127   :  { %1524 = vmatmul.msk.bf16.vlgmr.msrb.gmra.mxu2 %vm35_vm0, %v1743_v12 }
 0x128   :  { %1189 = vmatpush.bf16.msrb.mxu2 %v1563_v33  ;;  %v470_v33 = vld [vmem:[%s2207_s2 + $0x20] sm:$0xf] }
 0x12a   :  { %v152_v38 = vpop.f32.mrf.mxu2 }
 0x12b   :  { %1646 = vtanh.f32 %v152_v38 }
 0x12c   :  { %1190 = vmatpush.bf16.msrb.mxu2 %v1559_v36  ;;  %1648 = vtanh.f32 %v412_v54  ;;  %v622_v26 = vpop.f32.mrf.mxu0 }
 0x131   :  { %v1647_v49 = vpop.eup %1646 }
 0x132   :  { %v157_v52 = vpack.c.bf16 %v1647_v49, %v1647_v49  ;;  %v154_v53 = vpop.f32.mrf.mxu2  ;;  %v1649_v61 = vpop.eup %1648 }
 0x133   :  { %v417_v63 = vpack.c.bf16 %v1649_v61, %v1649_v61 }
 0x134   :  { %v163_v55 = vsel %vm91_vm1, %v157_v52, 0 }
 0x135   :  { %172 = vmatpush.bf16.msrb.mxu3 %v163_v55  ;;  %v423_v1 = vsel %vm91_vm1, %v417_v63, 0  ;;  %v938_v63 = vld [vmem:[%s2207_s2 + $0x44] sm:$0xf] }
 0x136   :  { %432 = vmatpush.bf16.msrb.mxu1 %v423_v1 }
 0x137   :  { %1544 = vmatmul.msk.bf16.vlgmr.msra.gmra.mxu2 %vm35_vm0, %v1743_v12 }
 0x138   :  { %1365 = vmatmul.msk.bf16.vlgmr.msrb.gmra.mxu3 %vm87_vm2, %v158_v57  ;;  %1293 = vmatpush.bf16.msra.mxu2 %v1583_v56  ;;  %v678_v57 = vld [vmem:[%s2207_s2 + $0x30] sm:$0xf] }
 0x139   :  { %1415 = vmatmul.msk.bf16.vlgmr.msrb.gmra.mxu1 %vm87_vm2, %v418_v2 }
 0x13a   :  { %v256_v62 = vpop.f32.mrf.mxu2 }
 0x13b   :  { %1650 = vtanh.f32 %v256_v62 }
 0x13c   :  { %1294 = vmatpush.bf16.msra.mxu2 %v1579_v60  ;;  %1652 = vtanh.f32 %v516_v6 }
 0x141   :  { %v1651_v3 = vpop.eup %1650 }
 0x142   :  { %v261_v4 = vpack.c.bf16 %v1651_v3, %v1651_v3  ;;  %v258_v5 = vpop.f32.mrf.mxu2  ;;  %v1653_v9 = vpop.eup %1652 }
 0x143   :  { %v521_v11 = vpack.c.bf16 %v1653_v9, %v1653_v9  ;;  %v782_v5 = vld [vmem:[%s2207_s2 + $0x38] sm:$0xf] }
 0x144   :  { %v267_v7 = vsel %vm91_vm1, %v261_v4, 0 }
 0x145   :  { %276 = vmatpush.bf16.msra.mxu3 %v267_v7  ;;  %v527_v14 = vsel %vm91_vm1, %v521_v11, 0 }
 0x146   :  { %536 = vmatpush.bf16.msra.mxu1 %v527_v14 }
 0x147   :  { %1564 = vmatmul.msk.bf16.vlgmr.msrb.gmra.mxu2 %vm35_vm0, %v1743_v12 }
 0x148   :  { %1385 = vmatmul.msk.bf16.vlgmr.msra.gmra.mxu3 %vm87_vm2, %v262_v8 }
 0x149   :  { %1435 = vmatmul.msk.bf16.vlgmr.msra.gmra.mxu1 %vm87_vm2, %v522_v15 }
 0x14a   :  { %v360_v10 = vpop.f32.mrf.mxu2 }
 0x14b   :  { %1654 = vtanh.f32 %v360_v10 }
 0x14c   :  { %1656 = vtanh.f32 %v620_v20  ;;  %v886_v20 = vld [vmem:[%s2207_s2 + $0x40] sm:$0xf] }
 0x151   :  { %v1655_v16 = vpop.eup %1654 }
 0x152   :  { %v365_v17 = vpack.c.bf16 %v1655_v16, %v1655_v16  ;;  %v362_v18 = vpop.f32.mrf.mxu2  ;;  %v1657_v23 = vpop.eup %1656 }
 0x153   :  { %v625_v25 = vpack.c.bf16 %v1657_v23, %v1657_v23 }
 0x154   :  { %v371_v21 = vsel %vm91_vm1, %v365_v17, 0 }
 0x155   :  { %380 = vmatpush.bf16.msrb.mxu3 %v371_v21  ;;  %v631_v27 = vsel %vm91_vm1, %v625_v25, 0 }
 0x156   :  { %640 = vmatpush.bf16.msrb.mxu1 %v631_v27  ;;  %v226_v11 = vpop.f32.mrf.mxu1 }
 0x157   :  { %1584 = vmatmul.msk.bf16.vlgmr.msra.gmra.mxu2 %vm35_vm0, %v1743_v12  ;;  %v724_v12 = vpop.f32.mrf.mxu0 }
 0x158   :  { %1405 = vmatmul.msk.bf16.vlgmr.msrb.gmra.mxu3 %vm87_vm2, %v366_v22 }
 0x159   :  { %1455 = vmatmul.msk.bf16.vlgmr.msrb.gmra.mxu1 %vm87_vm2, %v626_v28  ;;  %v1146_v28 = vld [vmem:[%s2207_s2 + $0x54] sm:$0xf] }
 0x15a   :  { %v464_v24 = vpop.f32.mrf.mxu2 }
 0x15b   :  { %1658 = vtanh.f32 %v464_v24 }
 0x15c   :  { %1660 = vtanh.f32 %v724_v12 }
 0x15e   :  { %v228_v21 = vpop.f32.mrf.mxu1 }
 0x15f   :  { %v726_v37 = vpop.f32.mrf.mxu0 }
 0x161   :  { %v1659_v29 = vpop.eup %1658 }
 0x162   :  { %v469_v30 = vpack.c.bf16 %v1659_v29, %v1659_v29  ;;  %v466_v31 = vpop.f32.mrf.mxu2  ;;  %v1661_v34 = vpop.eup %1660 }
 0x163   :  { %v729_v36 = vpack.c.bf16 %v1661_v34, %v1661_v34 }
 0x164   :  { %v475_v32 = vsel %vm91_vm1, %v469_v30, 0 }
 0x165   :  { %484 = vmatpush.bf16.msra.mxu3 %v475_v32  ;;  %v735_v38 = vsel %vm91_vm1, %v729_v36, 0 }
 0x166   :  { %744 = vmatpush.bf16.msra.mxu1 %v735_v38  ;;  %v330_v27 = vpop.f32.mrf.mxu1 }
 0x167   :  { %v828_v43 = vpop.f32.mrf.mxu0 }
 0x168   :  { %1425 = vmatmul.msk.bf16.vlgmr.msra.gmra.mxu3 %vm87_vm2, %v470_v33  ;;  %v990_v33 = vld [vmem:[%s2207_s2 + $0x48] sm:$0xf] }
 0x169   :  { %1475 = vmatmul.msk.bf16.vlgmr.msra.gmra.mxu1 %vm87_vm2, %v730_v39 }
 0x16a   :  { %v568_v35 = vpop.f32.mrf.mxu2 }
 0x16b   :  { %1662 = vtanh.f32 %v568_v35 }
 0x16c   :  { %1664 = vtanh.f32 %v828_v43 }
 0x16e   :  { %v332_v34 = vpop.f32.mrf.mxu1 }
 0x16f   :  { %v830_v49 = vpop.f32.mrf.mxu0 }
 0x171   :  { %v1663_v40 = vpop.eup %1662 }
 0x172   :  { %v573_v41 = vpack.c.bf16 %v1663_v40, %v1663_v40  ;;  %v570_v42 = vpop.f32.mrf.mxu2  ;;  %v1665_v46 = vpop.eup %1664 }
 0x173   :  { %v833_v48 = vpack.c.bf16 %v1665_v46, %v1665_v46 }
 0x174   :  { %v579_v44 = vsel %vm91_vm1, %v573_v41, 0 }
 0x175   :  { %588 = vmatpush.bf16.msrb.mxu3 %v579_v44  ;;  %v839_v50 = vsel %vm91_vm1, %v833_v48, 0  ;;  %v1250_v44 = vld [vmem:[%s2207_s2 + $0x5c] sm:$0xf] }
 0x176   :  { %848 = vmatpush.bf16.msrb.mxu1 %v839_v50 }
 0x177   :  { %v932_v55 = vpop.f32.mrf.mxu0 }
 0x178   :  { %1445 = vmatmul.msk.bf16.vlgmr.msrb.gmra.mxu3 %vm87_vm2, %v574_v45 }
 0x179   :  { %1495 = vmatmul.msk.bf16.vlgmr.msrb.gmra.mxu1 %vm87_vm2, %v834_v51 }
 0x17a   :  { %v672_v47 = vpop.f32.mrf.mxu2 }
 0x17b   :  { %1666 = vtanh.f32 %v672_v47 }
 0x17c   :  { %1668 = vtanh.f32 %v932_v55 }
 0x17f   :  { %v934_v61 = vpop.f32.mrf.mxu0 }
 0x181   :  { %v1667_v52 = vpop.eup %1666 }
 0x182   :  { %v677_v53 = vpack.c.bf16 %v1667_v52, %v1667_v52  ;;  %v674_v54 = vpop.f32.mrf.mxu2  ;;  %v1669_v58 = vpop.eup %1668 }
 0x183   :  { %v937_v60 = vpack.c.bf16 %v1669_v58, %v1669_v58 }
 0x184   :  { %v683_v56 = vsel %vm91_vm1, %v677_v53, 0 }
 0x185   :  { %692 = vmatpush.bf16.msra.mxu3 %v683_v56  ;;  %v943_v62 = vsel %vm91_vm1, %v937_v60, 0  ;;  %v1323_v60 = vld [vmem:[%s2208_s3] sm:$0xff] }
 0x186   :  { %952 = vmatpush.bf16.msra.mxu1 %v943_v62  ;;  %v1690_v62 = vmov 0  }
 0x187   :  { %v1036_v3 = vpop.f32.mrf.mxu0  ;;  %1637 = vset.pattern.permute.xlu0 %v1690_v62 }
 0x188   :  { %1465 = vmatmul.msk.bf16.vlgmr.msra.gmra.mxu3 %vm87_vm2, %v678_v57  ;;  %1326 = vperm.xlu0 %1637, %v1323_v60  }
 0x189   :  { %1515 = vmatmul.msk.bf16.vlgmr.msra.gmra.mxu1 %vm87_vm2, %v938_v63  ;;  %v1198_v63 = vld [vmem:[%s2207_s2 + $0x58] sm:$0xf] }
 0x18a   :  { %v776_v59 = vpop.f32.mrf.mxu2 }
 0x18b   :  { %1670 = vtanh.f32 %v776_v59 }
 0x18c   :  { %1672 = vtanh.f32 %v1036_v3 }
 0x18f   :  { %v1038_v9 = vpop.f32.mrf.mxu0 }
 0x191   :  { %v1671_v0 = vpop.eup %1670 }
 0x192   :  { %v781_v1 = vpack.c.bf16 %v1671_v0, %v1671_v0  ;;  %v778_v2 = vpop.f32.mrf.mxu2  ;;  %v1673_v6 = vpop.eup %1672 }
 0x193   :  { %v1041_v8 = vpack.c.bf16 %v1673_v6, %v1673_v6 }
 0x194   :  { %v787_v4 = vsel %vm91_vm1, %v781_v1, 0 }
 0x195   :  { %796 = vmatpush.bf16.msrb.mxu3 %v787_v4  ;;  %v1047_v10 = vsel %vm91_vm1, %v1041_v8, 0 }
 0x196   :  { %1056 = vmatpush.bf16.msrb.mxu1 %v1047_v10 }
 0x197   :  { %v1140_v17 = vpop.f32.mrf.mxu0 }
 0x198   :  { %1485 = vmatmul.msk.bf16.vlgmr.msrb.gmra.mxu3 %vm87_vm2, %v782_v5 }
 0x199   :  { %1535 = vmatmul.msk.bf16.vlgmr.msrb.gmra.mxu1 %vm87_vm2, %v1042_v13 }
 0x19a   :  { %v880_v7 = vpop.f32.mrf.mxu2 }
 0x19b   :  { %1674 = vtanh.f32 %v880_v7 }
 0x19c   :  { %1676 = vtanh.f32 %v1140_v17 }
 0x19f   :  { %v1142_v25 = vpop.f32.mrf.mxu0 }
 0x1a1   :  { %v1675_v14 = vpop.eup %1674 }
 0x1a2   :  { %v885_v15 = vpack.c.bf16 %v1675_v14, %v1675_v14  ;;  %v882_v16 = vpop.f32.mrf.mxu2  ;;  %v1677_v22 = vpop.eup %1676 }
 0x1a3   :  { %v1145_v24 = vpack.c.bf16 %v1677_v22, %v1677_v22 }
 0x1a4   :  { %v891_v18 = vsel %vm91_vm1, %v885_v15, 0 }
 0x1a5   :  { %900 = vmatpush.bf16.msra.mxu3 %v891_v18  ;;  %v1151_v26 = vsel %vm91_vm1, %v1145_v24, 0 }
 0x1a6   :  { %1160 = vmatpush.bf16.msra.mxu1 %v1151_v26 }
 0x1a7   :  { %v1244_v12 = vpop.f32.mrf.mxu0 }
 0x1a8   :  { %1505 = vmatmul.msk.bf16.vlgmr.msra.gmra.mxu3 %vm87_vm2, %v886_v20 }
 0x1a9   :  { %1555 = vmatmul.msk.bf16.vlgmr.msra.gmra.mxu1 %vm87_vm2, %v1146_v28 }
 0x1aa   :  { %v984_v23 = vpop.f32.mrf.mxu2 }
 0x1ab   :  { %1678 = vtanh.f32 %v984_v23 }
 0x1ac   :  { %1680 = vtanh.f32 %v1244_v12 }
 0x1af   :  { %v1246_v38 = vpop.f32.mrf.mxu0 }
 0x1b1   :  { %v1679_v29 = vpop.eup %1678 }
 0x1b2   :  { %v989_v30 = vpack.c.bf16 %v1679_v29, %v1679_v29  ;;  %v986_v31 = vpop.f32.mrf.mxu2  ;;  %v1681_v35 = vpop.eup %1680 }
 0x1b3   :  { %v1249_v37 = vpack.c.bf16 %v1681_v35, %v1681_v35 }
 0x1b4   :  { %v995_v32 = vsel %vm91_vm1, %v989_v30, 0 }
 0x1b5   :  { %1004 = vmatpush.bf16.msrb.mxu3 %v995_v32  ;;  %v1255_v41 = vsel %vm91_vm1, %v1249_v37, 0 }
 0x1b6   :  { %v434_v42 = vpop.f32.mrf.mxu1  ;;  %1264 = vmatpush.bf16.msrb.mxu1 %v1255_v41 }
 0x1b8   :  { %1525 = vmatmul.msk.bf16.vlgmr.msrb.gmra.mxu3 %vm87_vm2, %v990_v33 }
 0x1b9   :  { %1575 = vmatmul.msk.bf16.vlgmr.msrb.gmra.mxu1 %vm87_vm2, %v1250_v44 }
 0x1ba   :  { %v1088_v36 = vpop.f32.mrf.mxu2 }
 0x1bb   :  { %1682 = vtanh.f32 %v1088_v36  ;;  %v174_v39 = vpop.f32.mrf.mxu3 }
 0x1bc   :  { %v178_v40 = vadd.f32 %v174_v39, %v2021_v19  ;;  %v1094_v19 = vld [vmem:[%s2207_s2 + $0x50] sm:$0xf] }
 0x1be   :  { %v230_v43 = vadd.f32 %v226_v11, %v178_v40  ;;  %v436_v50 = vpop.f32.mrf.mxu1  ;;  %v1302_v11 = vld [vmem:[%s2207_s2 + $0x60] sm:$0xf] }
 0x1c1   :  { %v1683_v45 = vpop.eup %1682 }
 0x1c2   :  { %v1093_v46 = vpack.c.bf16 %v1683_v45, %v1683_v45  ;;  %v1090_v47 = vpop.f32.mrf.mxu2 }
 0x1c3   :  { %v176_v48 = vpop.f32.mrf.mxu3 }
 0x1c4   :  { %v1099_v49 = vsel %vm91_vm1, %v1093_v46, 0 }
 0x1c5   :  { %1108 = vmatpush.bf16.msra.mxu3 %v1099_v49 }
 0x1c6   :  { %v538_v54 = vpop.f32.mrf.mxu1 }
 0x1c8   :  { %1545 = vmatmul.msk.bf16.vlgmr.msra.gmra.mxu3 %vm87_vm2, %v1094_v19 }
 0x1ca   :  { %v1192_v51 = vpop.f32.mrf.mxu2 }
 0x1cb   :  { %1684 = vtanh.f32 %v1192_v51  ;;  %v278_v52 = vpop.f32.mrf.mxu3 }
 0x1cc   :  { %v282_v53 = vadd.f32 %v278_v52, %v230_v43 }
 0x1ce   :  { %v334_v55 = vadd.f32 %v330_v27, %v282_v53  ;;  %v540_v0 = vpop.f32.mrf.mxu1 }
 0x1d1   :  { %v1685_v56 = vpop.eup %1684 }
 0x1d2   :  { %v1197_v57 = vpack.c.bf16 %v1685_v56, %v1685_v56  ;;  %v1194_v58 = vpop.f32.mrf.mxu2 }
 0x1d3   :  { %v280_v59 = vpop.f32.mrf.mxu3 }
 0x1d4   :  { %v1203_v61 = vsel %vm91_vm1, %v1197_v57, 0 }
 0x1d5   :  { %1212 = vmatpush.bf16.msrb.mxu3 %v1203_v61 }
 0x1d6   :  { %v642_v4 = vpop.f32.mrf.mxu1 }
 0x1d8   :  { %1565 = vmatmul.msk.bf16.vlgmr.msrb.gmra.mxu3 %vm87_vm2, %v1198_v63 }
 0x1da   :  { %v1296_v1 = vpop.f32.mrf.mxu2 }
 0x1db   :  { %1686 = vtanh.f32 %v1296_v1  ;;  %v382_v2 = vpop.f32.mrf.mxu3 }
 0x1dc   :  { %v386_v3 = vadd.f32 %v382_v2, %v334_v55 }
 0x1de   :  { %v438_v5 = vadd.f32 %v434_v42, %v386_v3  ;;  %v644_v13 = vpop.f32.mrf.mxu1 }
 0x1e1   :  { %v1687_v6 = vpop.eup %1686 }
 0x1e2   :  { %v1301_v7 = vpack.c.bf16 %v1687_v6, %v1687_v6  ;;  %v1298_v8 = vpop.f32.mrf.mxu2 }
 0x1e3   :  { %v384_v9 = vpop.f32.mrf.mxu3 }
 0x1e4   :  { %v1307_v10 = vsel %vm91_vm1, %v1301_v7, 0 }
 0x1e5   :  { %1316 = vmatpush.bf16.msra.mxu3 %v1307_v10 }
 0x1e6   :  { %v746_v16 = vpop.f32.mrf.mxu1 }
 0x1e8   :  { %1585 = vmatmul.msk.bf16.vlgmr.msra.gmra.mxu3 %vm87_vm2, %v1302_v11 }
 0x1eb   :  { %v486_v14 = vpop.f32.mrf.mxu3 }
 0x1ec   :  { %v490_v15 = vadd.f32 %v486_v14, %v438_v5 }
 0x1ee   :  { %v542_v17 = vadd.f32 %v538_v54, %v490_v15  ;;  %v748_v20 = vpop.f32.mrf.mxu1 }
 0x1f3   :  { %v488_v18 = vpop.f32.mrf.mxu3 }
 0x1f6   :  { %v850_v23 = vpop.f32.mrf.mxu1 }
 0x1fa   :  { %v1327_v58 = vpop.permute.xlu0 %1326 }
 0x1fb   :  { %v590_v21 = vpop.f32.mrf.mxu3 }
 0x1fc   :  { %v594_v22 = vadd.f32 %v590_v21, %v542_v17 }
 0x1fe   :  { %v646_v24 = vadd.f32 %v642_v4, %v594_v22  ;;  %v852_v26 = vpop.f32.mrf.mxu1 }
 0x203   :  { %v592_v25 = vpop.f32.mrf.mxu3 }
 0x206   :  { %v954_v29 = vpop.f32.mrf.mxu1 }
 0x20b   :  { %v694_v27 = vpop.f32.mrf.mxu3 }
 0x20c   :  { %v698_v28 = vadd.f32 %v694_v27, %v646_v24 }
 0x20e   :  { %v750_v30 = vadd.f32 %v746_v16, %v698_v28  ;;  %v956_v12 = vpop.f32.mrf.mxu1 }
 0x213   :  { %v696_v31 = vpop.f32.mrf.mxu3 }
 0x216   :  { %v1058_v34 = vpop.f32.mrf.mxu1 }
 0x21b   :  { %v798_v32 = vpop.f32.mrf.mxu3 }
 0x21c   :  { %v802_v33 = vadd.f32 %v798_v32, %v750_v30 }
 0x21e   :  { %v854_v35 = vadd.f32 %v850_v23, %v802_v33  ;;  %v1060_v37 = vpop.f32.mrf.mxu1 }
 0x223   :  { %v800_v36 = vpop.f32.mrf.mxu3 }
 0x226   :  { %v1162_v40 = vpop.f32.mrf.mxu1 }
 0x22b   :  { %v902_v38 = vpop.f32.mrf.mxu3 }
 0x22c   :  { %v906_v39 = vadd.f32 %v902_v38, %v854_v35 }
 0x22e   :  { %v958_v41 = vadd.f32 %v954_v29, %v906_v39  ;;  %v1164_v43 = vpop.f32.mrf.mxu1 }
 0x233   :  { %v904_v42 = vpop.f32.mrf.mxu3 }
 0x236   :  { %v1266_v46 = vpop.f32.mrf.mxu1 }
 0x23b   :  { %v1006_v44 = vpop.f32.mrf.mxu3 }
 0x23c   :  { %v1010_v45 = vadd.f32 %v1006_v44, %v958_v41 }
 0x23e   :  { %v1062_v47 = vadd.f32 %v1058_v34, %v1010_v45  ;;  %v1268_v49 = vpop.f32.mrf.mxu1 }
 0x243   :  { %v1008_v48 = vpop.f32.mrf.mxu3 }
 0x24b   :  { %v1110_v19 = vpop.f32.mrf.mxu3 }
 0x24c   :  { %v1114_v52 = vadd.f32 %v1110_v19, %v1062_v47 }
 0x24e   :  { %v1166_v54 = vadd.f32 %v1162_v40, %v1114_v52 }
 0x253   :  { %v1112_v50 = vpop.f32.mrf.mxu3 }
 0x25b   :  { %v1214_v51 = vpop.f32.mrf.mxu3 }
 0x25c   :  { %v1218_v55 = vadd.f32 %v1214_v51, %v1166_v54 }
 0x25e   :  { %v1270_v56 = vadd.f32 %v1266_v46, %v1218_v55 }
 0x263   :  { %v1216_v53 = vpop.f32.mrf.mxu3 }
 0x26b   :  { %v1318_v57 = vpop.f32.mrf.mxu3 }
 0x26c   :  { %v1322_v59 = vadd.f32 %v1318_v57, %v1270_v56 }
 0x26e   :  { %v1329_v60 = vadd.f32 %v1327_v58, %v1322_v59 }
 0x270   :  { %1688 = vtanh.f32 %v1329_v60 }
 0x273   :  { %v1320_v61 = vpop.f32.mrf.mxu3 }
 0x276   :  { %v1689_v62 = vpop.eup %1688 }
 0x277   :  { %1331 = vst [vmem:[%s2209_s4] sm:$0xff] %v1689_v62 }

</bundles_post_ra>
